<compile_context>
chip_gen: v6e
topology: v6e:2x2x1
jax: 0.10.0
libtpu: 0.0.40
codegen_flags: <defaults>
</compile_context>

<pallas_src>
import math
import functools

import jax
import jax.numpy as jnp
from jax import lax
from jax.experimental import pallas as pl
from jax.experimental.pallas import tpu as pltpu

# ----------------------------- config ---------------------------------------
NUM_INPUT_CLASSES = 16
H_DIM = 32
N_LAYERS = 2
OUTPUT_SIZE = 10
BATCH = 2
SEQ = 8


# ----------------------------- kernel ---------------------------------------
def lstm_kernel(tokens_ref, emb_ref, w_ih_ref, w_hh_ref, b_ref,
                h0_ref, c0_ref, w_out_ref, b_out_ref,
                logits_ref, hN_ref, cN_ref,
                embproj_ref,
                *, n_layers, seq_len, batch, h_dim):
    """Fused embedding + stacked-LSTM (wavefront schedule) + output Linear.

    tokens_ref   : (B, T)  int32, SMEM   raw token ids
    emb_ref      : (V, H)  f32,  VMEM    embedding table (unscaled)
    w_ih_ref     : (L, H, 4H) f32        pre-transposed input->gate weights (i,f,g,o)
    w_hh_ref     : (L, H, 4H) f32        pre-transposed hidden->gate weights
    b_ref        : (L, 1, 4H) f32        b_ih + b_hh (pre-summed)
    h0_ref,c0_ref: (L, B, H)  f32        initial state
    w_out_ref    : (H, O)     f32        pre-transposed output Linear weight
    b_out_ref    : (1, O)     f32        output Linear bias
    logits_ref   : (B, T, O)  f32 out    logits, batch-first layout
    hN_ref,cN_ref: (L, B, H)  f32 out    final state
    embproj_ref  : (V, 4H)    f32 scratch  (emb*sqrt(H)) @ W_ih[0] + b[0]
    """
    mm = functools.partial(
        lax.dot_general,
        dimension_numbers=(((1,), (0,)), ((), ())),   # native-layout matmul
        preferred_element_type=jnp.float32,
    )

    # One-time, off the recurrence: project the tiny embedding table through
    # layer-0's input weights (bias folded in).  Layer-0's per-step input
    # contribution then becomes a pure row gather -- no matmul on the serial
    # chain and no per-call XLA gather before the kernel.
    embproj_ref[...] = mm(emb_ref[...] * math.sqrt(h_dim), w_ih_ref[0]) + b_ref[0]

    # Hoist all weight/bias loads out of the recurrence (values, not refs).
    w_hh = [w_hh_ref[l] for l in range(n_layers)]
    w_ih = [w_ih_ref[l] for l in range(n_layers)]
    bias = [b_ref[l] for l in range(n_layers)]

    h = [h0_ref[l] for l in range(n_layers)]          # (B, H) each
    c = [c0_ref[l] for l in range(n_layers)]
    outs = [[None] * seq_len for _ in range(n_layers)]

    def cell_step(l, x_gate, h_prev, c_prev):
        # Only h_prev @ W_hh sits on layer l's serial dependency chain.
        gates = x_gate + mm(h_prev, w_hh[l])           # (B, 4H)
        # Two full-vreg EUP pushes instead of four sub-slice activations.
        sig = jax.nn.sigmoid(gates)
        th = jnp.tanh(gates)
        i = sig[:, 0 * h_dim:1 * h_dim]
        f = sig[:, 1 * h_dim:2 * h_dim]
        g = th[:, 2 * h_dim:3 * h_dim]
        o = sig[:, 3 * h_dim:4 * h_dim]
        c_new = f * c_prev + i * g
        h_new = o * jnp.tanh(c_new)
        return h_new, c_new

    # Wavefront over (layer, time): layer l runs timestep t at wave s = t + l.
    # Longest dependency path: T + L - 1 cell steps (vs T * L fully serial).
    for s in range(seq_len + n_layers - 1):
        for l in range(n_layers):
            t = s - l
            if t < 0 or t >= seq_len:
                continue
            if l == 0:
                # Gather this timestep's pre-projected rows (bias included).
                x_gate = jnp.concatenate(
                    [embproj_ref[pl.ds(tokens_ref[bb, t], 1), :]
                     for bb in range(batch)],
                    axis=0)                            # (B, 4H)
            else:
                # Input projection from the layer below, same timestep; off
                # the recurrent chain once h_{l-1,t} is available.
                x_gate = mm(outs[l - 1][t], w_ih[l]) + bias[l]
            h[l], c[l] = cell_step(l, x_gate, h[l], c[l])
            outs[l][t] = h[l]

    # Final state (one static store per layer).
    for l in range(n_layers):
        hN_ref[l] = h[l]
        cN_ref[l] = c[l]

    # Output projection, written directly in (B, T, O) layout so the wrapper
    # needs no trailing reshape/transpose.
    for bb in range(batch):
        seq_b = jnp.concatenate(
            [outs[n_layers - 1][t][bb:bb + 1, :] for t in range(seq_len)],
            axis=0)                                    # (T, H)
        logits_ref[bb, :, :] = mm(seq_b, w_out_ref[...]) + b_out_ref[...]


# ----------------------------- wrapper ---------------------------------------
def prepare_params(params):
    """One-time weight-layout prep; call once, outside the per-call path."""
    return {
        "embedding": params["embedding"].astype(jnp.float32),     # (V, H)
        "w_ih_t": jnp.transpose(params["w_ih"], (0, 2, 1)),       # (L, H, 4H)
        "w_hh_t": jnp.transpose(params["w_hh"], (0, 2, 1)),       # (L, H, 4H)
        "bias": params["b_ih"] + params["b_hh"],                  # (L, 1, 4H)
        "w_out_t": jnp.transpose(params["w_out"]),                # (H, O)
        "b_out": params["b_out"],                                 # (1, O)
    }


@jax.jit
def basic_lstm_forward(tokens, prep, state):
    """Equivalent of Model.forward(x, state). tokens: (B, T) int32."""
    h0, c0 = state
    B, T = tokens.shape
    V, H = prep["embedding"].shape
    O = prep["w_out_t"].shape[1]
    L = prep["w_ih_t"].shape[0]

    kernel = functools.partial(lstm_kernel, n_layers=L, seq_len=T,
                               batch=B, h_dim=H)
    vmem = pl.BlockSpec(memory_space=pltpu.MemorySpace.VMEM)
    smem = pl.BlockSpec(memory_space=pltpu.MemorySpace.SMEM)

    logits, hN, cN = pl.pallas_call(
        kernel,
        out_shape=(
            jax.ShapeDtypeStruct((B, T, O), jnp.float32),
            jax.ShapeDtypeStruct((L, B, H), jnp.float32),
            jax.ShapeDtypeStruct((L, B, H), jnp.float32),
        ),
        in_specs=[smem] + [vmem] * 8,
        out_specs=(vmem, vmem, vmem),
        scratch_shapes=[pltpu.VMEM((V, 4 * H), jnp.float32)],
    )(tokens.astype(jnp.int32), prep["embedding"], prep["w_ih_t"],
      prep["w_hh_t"], prep["bias"], h0, c0, prep["w_out_t"], prep["b_out"])

    return logits, (hN, cN)


# ----------------------------- reference (pure JAX) ---------------------------
def reference_forward(tokens, params, state):
    h0, c0 = state
    x = jnp.take(params["embedding"], tokens, axis=0) * math.sqrt(H_DIM)
    inp = x                                            # (B, T, H)
    h_all, c_all = [], []
    for l in range(N_LAYERS):
        w_ih = params["w_ih"][l]
        w_hh = params["w_hh"][l]
        b = (params["b_ih"][l] + params["b_hh"][l])[0]

        def step(carry, x_t):
            h, c = carry
            gates = x_t @ w_ih.T + h @ w_hh.T + b
            i, f, g, o = jnp.split(gates, 4, axis=-1)
            i = jax.nn.sigmoid(i)
            f = jax.nn.sigmoid(f)
            g = jnp.tanh(g)
            o = jax.nn.sigmoid(o)
            c = f * c + i * g
            h = o * jnp.tanh(c)
            return (h, c), h

        (hf, cf), ys = lax.scan(step, (h0[l], c0[l]),
                                jnp.transpose(inp, (1, 0, 2)))
        inp = jnp.transpose(ys, (1, 0, 2))
        h_all.append(hf)
        c_all.append(cf)
    logits = inp @ params["w_out"].T + params["b_out"][0]
    return logits, (jnp.stack(h_all), jnp.stack(c_all))


# ----------------------------- main -------------------------------------------
def init_params(key):
    kE, kWI, kWH, kBI, kBH, kWO, kBO = jax.random.split(key, 7)
    k = 1.0 / math.sqrt(H_DIM)
    u = lambda kk, shape: jax.random.uniform(kk, shape, jnp.float32, -k, k)
    return {
        "embedding": jax.random.normal(kE, (NUM_INPUT_CLASSES, H_DIM), jnp.float32),
        "w_ih": u(kWI, (N_LAYERS, 4 * H_DIM, H_DIM)),
        "w_hh": u(kWH, (N_LAYERS, 4 * H_DIM, H_DIM)),
        "b_ih": u(kBI, (N_LAYERS, 1, 4 * H_DIM)),
        "b_hh": u(kBH, (N_LAYERS, 1, 4 * H_DIM)),
        "w_out": u(kWO, (OUTPUT_SIZE, H_DIM)),
        "b_out": u(kBO, (1, OUTPUT_SIZE)),
    }


if __name__ == "__main__":
    key = jax.random.PRNGKey(0)
    k_tok, k_param = jax.random.split(key)

    tokens = jax.random.randint(k_tok, (BATCH, SEQ), 0, NUM_INPUT_CLASSES,
                                dtype=jnp.int32)
    params = init_params(k_param)
    prep = prepare_params(params)   # one-time layout prep, outside jitted path

    # get_init_state equivalent
    h0 = jnp.zeros((N_LAYERS, BATCH, H_DIM), jnp.float32)
    c0 = jnp.zeros((N_LAYERS, BATCH, H_DIM), jnp.float32)

    logits, (hN, cN) = basic_lstm_forward(tokens, prep, (h0, c0))
    jax.block_until_ready((logits, hN, cN))

    ref_logits, (ref_h, ref_c) = reference_forward(tokens, params, (h0, c0))
    assert logits.shape == (BATCH, SEQ, OUTPUT_SIZE)
    assert hN.shape == (N_LAYERS, BATCH, H_DIM)
    assert cN.shape == (N_LAYERS, BATCH, H_DIM)
    assert jnp.allclose(logits, ref_logits, atol=1e-3, rtol=1e-3)
    assert jnp.allclose(hN, ref_h, atol=1e-3, rtol=1e-3)
    assert jnp.allclose(cN, ref_c, atol=1e-3, rtol=1e-3)

    print("KERNEL_OK")
</pallas_src>

<mosaic_0001>
module attributes {stable_mosaic.version = 11 : i64} {
  func.func @lstm_kernel(%arg0: memref<2x8xi32, #tpu.memory_space<smem>>, %arg1: memref<16x32xf32, #tpu.memory_space<vmem>>, %arg2: memref<2x32x128xf32, #tpu.memory_space<vmem>>, %arg3: memref<2x32x128xf32, #tpu.memory_space<vmem>>, %arg4: memref<2x1x128xf32, #tpu.memory_space<vmem>>, %arg5: memref<2x2x32xf32, #tpu.memory_space<vmem>>, %arg6: memref<2x2x32xf32, #tpu.memory_space<vmem>>, %arg7: memref<32x10xf32, #tpu.memory_space<vmem>>, %arg8: memref<1x10xf32, #tpu.memory_space<vmem>>, %arg9: memref<2x8x10xf32, #tpu.memory_space<vmem>>, %arg10: memref<2x2x32xf32, #tpu.memory_space<vmem>>, %arg11: memref<2x2x32xf32, #tpu.memory_space<vmem>>, %arg12: memref<16x128xf32, #tpu.memory_space<vmem>>) attributes {dimension_semantics = [], scalar_prefetch = 0 : i64, scratch_operands = 1 : i64, tpu.core_type = #tpu.core_type<tc>} {
    %c0 = arith.constant 0 : index
    %c0_0 = arith.constant 0 : index
    %0 = vector.load %arg1[%c0, %c0_0] : memref<16x32xf32, #tpu.memory_space<vmem>>, vector<16x32xf32>
    %cst = arith.constant 5.65685415 : f32
    %1 = vector.broadcast %cst : f32 to vector<16x32xf32>
    %2 = arith.mulf %0, %1 : vector<16x32xf32>
    %c0_1 = arith.constant 0 : index
    %c0_2 = arith.constant 0 : index
    %c0_3 = arith.constant 0 : index
    %3 = vector.load %arg2[%c0_1, %c0_2, %c0_3] : memref<2x32x128xf32, #tpu.memory_space<vmem>>, vector<1x32x128xf32>
    %4 = vector.shape_cast %3 : vector<1x32x128xf32> to vector<32x128xf32>
    %cst_4 = arith.constant dense<0.000000e+00> : vector<16x128xf32>
    %5 = tpu.matmul %2, %4, %cst_4 {dimension_numbers = #tpu.dot_dimension_numbers<[1], [0], [0], [1], [0, 0, 1, 1], [], []>} : vector<16x32xf32>, vector<32x128xf32>, vector<16x128xf32> -> vector<16x128xf32>
    %c0_5 = arith.constant 0 : index
    %c0_6 = arith.constant 0 : index
    %c0_7 = arith.constant 0 : index
    %6 = vector.load %arg4[%c0_5, %c0_6, %c0_7] : memref<2x1x128xf32, #tpu.memory_space<vmem>>, vector<1x1x128xf32>
    %7 = vector.shape_cast %6 : vector<1x1x128xf32> to vector<1x128xf32>
    %8 = vector.broadcast %7 : vector<1x128xf32> to vector<16x128xf32>
    %9 = arith.addf %5, %8 : vector<16x128xf32>
    %c0_8 = arith.constant 0 : index
    %c0_9 = arith.constant 0 : index
    %10 = vector.load %arg12[%c0_8, %c0_9] : memref<16x128xf32, #tpu.memory_space<vmem>>, vector<16x128xf32>
    tpu.vector_store %arg12[%c0_8, %c0_9], %9 {strides = array<i32>} : memref<16x128xf32, #tpu.memory_space<vmem>>, vector<16x128xf32>,
    %c0_10 = arith.constant 0 : index
    %c0_11 = arith.constant 0 : index
    %c0_12 = arith.constant 0 : index
    %11 = vector.load %arg3[%c0_10, %c0_11, %c0_12] : memref<2x32x128xf32, #tpu.memory_space<vmem>>, vector<1x32x128xf32>
    %12 = vector.shape_cast %11 : vector<1x32x128xf32> to vector<32x128xf32>
    %c1 = arith.constant 1 : index
    %c0_13 = arith.constant 0 : index
    %c0_14 = arith.constant 0 : index
    %13 = vector.load %arg3[%c1, %c0_13, %c0_14] : memref<2x32x128xf32, #tpu.memory_space<vmem>>, vector<1x32x128xf32>
    %14 = vector.shape_cast %13 : vector<1x32x128xf32> to vector<32x128xf32>
    %c1_15 = arith.constant 1 : index
    %c0_16 = arith.constant 0 : index
    %c0_17 = arith.constant 0 : index
    %15 = vector.load %arg2[%c1_15, %c0_16, %c0_17] : memref<2x32x128xf32, #tpu.memory_space<vmem>>, vector<1x32x128xf32>
    %16 = vector.shape_cast %15 : vector<1x32x128xf32> to vector<32x128xf32>
    %c1_18 = arith.constant 1 : index
    %c0_19 = arith.constant 0 : index
    %c0_20 = arith.constant 0 : index
    %17 = vector.load %arg4[%c1_18, %c0_19, %c0_20] : memref<2x1x128xf32, #tpu.memory_space<vmem>>, vector<1x1x128xf32>
    %18 = vector.shape_cast %17 : vector<1x1x128xf32> to vector<1x128xf32>
    %c0_21 = arith.constant 0 : index
    %c0_22 = arith.constant 0 : index
    %c0_23 = arith.constant 0 : index
    %19 = vector.load %arg5[%c0_21, %c0_22, %c0_23] : memref<2x2x32xf32, #tpu.memory_space<vmem>>, vector<1x2x32xf32>
    %20 = vector.shape_cast %19 : vector<1x2x32xf32> to vector<2x32xf32>
    %c1_24 = arith.constant 1 : index
    %c0_25 = arith.constant 0 : index
    %c0_26 = arith.constant 0 : index
    %21 = vector.load %arg5[%c1_24, %c0_25, %c0_26] : memref<2x2x32xf32, #tpu.memory_space<vmem>>, vector<1x2x32xf32>
    %22 = vector.shape_cast %21 : vector<1x2x32xf32> to vector<2x32xf32>
    %c0_27 = arith.constant 0 : index
    %c0_28 = arith.constant 0 : index
    %c0_29 = arith.constant 0 : index
    %23 = vector.load %arg6[%c0_27, %c0_28, %c0_29] : memref<2x2x32xf32, #tpu.memory_space<vmem>>, vector<1x2x32xf32>
    %24 = vector.shape_cast %23 : vector<1x2x32xf32> to vector<2x32xf32>
    %c1_30 = arith.constant 1 : index
    %c0_31 = arith.constant 0 : index
    %c0_32 = arith.constant 0 : index
    %25 = vector.load %arg6[%c1_30, %c0_31, %c0_32] : memref<2x2x32xf32, #tpu.memory_space<vmem>>, vector<1x2x32xf32>
    %26 = vector.shape_cast %25 : vector<1x2x32xf32> to vector<2x32xf32>
    %c0_33 = arith.constant 0 : index
    %c0_34 = arith.constant 0 : index
    %27 = memref.load %arg0[%c0_33, %c0_34] : memref<2x8xi32, #tpu.memory_space<smem>>
    %28 = arith.index_cast %27 : i32 to index
    %c0_35 = arith.constant 0 : index
    %29 = vector.load %arg12[%28, %c0_35] : memref<16x128xf32, #tpu.memory_space<vmem>>, vector<1x128xf32>
    %c1_36 = arith.constant 1 : index
    %c0_37 = arith.constant 0 : index
    %30 = memref.load %arg0[%c1_36, %c0_37] : memref<2x8xi32, #tpu.memory_space<smem>>
    %31 = arith.index_cast %30 : i32 to index
    %c0_38 = arith.constant 0 : index
    %32 = vector.load %arg12[%31, %c0_38] : memref<16x128xf32, #tpu.memory_space<vmem>>, vector<1x128xf32>
    %33 = tpu.concatenate %29, %32 in 0 : vector<1x128xf32>, vector<1x128xf32> -> vector<2x128xf32>
    %cst_39 = arith.constant dense<0.000000e+00> : vector<2x128xf32>
    %34 = tpu.matmul %20, %12, %cst_39 {dimension_numbers = #tpu.dot_dimension_numbers<[1], [0], [0], [1], [0, 0, 1, 1], [], []>} : vector<2x32xf32>, vector<32x128xf32>, vector<2x128xf32> -> vector<2x128xf32>
    %35 = arith.addf %33, %34 : vector<2x128xf32>
    %36 = arith.negf %35 : vector<2x128xf32>
    %37 = math.exp %36 : vector<2x128xf32>
    %cst_40 = arith.constant 1.000000e+00 : f32
    %38 = vector.broadcast %cst_40 : f32 to vector<2x128xf32>
    %39 = arith.addf %38, %37 : vector<2x128xf32>
    %40 = arith.divf %38, %39 : vector<2x128xf32>
    %41 = math.tanh %35 : vector<2x128xf32>
    %42 = vector.extract_strided_slice %40 {offsets = [0, 0], sizes = [2, 32], strides = [1, 1]} : vector<2x128xf32> to vector<2x32xf32>
    %43 = vector.extract_strided_slice %40 {offsets = [0, 32], sizes = [2, 32], strides = [1, 1]} : vector<2x128xf32> to vector<2x32xf32>
    %44 = vector.extract_strided_slice %41 {offsets = [0, 64], sizes = [2, 32], strides = [1, 1]} : vector<2x128xf32> to vector<2x32xf32>
    %45 = vector.extract_strided_slice %40 {offsets = [0, 96], sizes = [2, 32], strides = [1, 1]} : vector<2x128xf32> to vector<2x32xf32>
    %46 = arith.mulf %43, %24 : vector<2x32xf32>
    %47 = arith.mulf %42, %44 : vector<2x32xf32>
    %48 = arith.addf %46, %47 : vector<2x32xf32>
    %49 = math.tanh %48 : vector<2x32xf32>
    %50 = arith.mulf %45, %49 : vector<2x32xf32>
    %c0_41 = arith.constant 0 : index
    %c1_42 = arith.constant 1 : index
    %51 = memref.load %arg0[%c0_41, %c1_42] : memref<2x8xi32, #tpu.memory_space<smem>>
    %52 = arith.index_cast %51 : i32 to index
    %c0_43 = arith.constant 0 : index
    %53 = vector.load %arg12[%52, %c0_43] : memref<16x128xf32, #tpu.memory_space<vmem>>, vector<1x128xf32>
    %c1_44 = arith.constant 1 : index
    %c1_45 = arith.constant 1 : index
    %54 = memref.load %arg0[%c1_44, %c1_45] : memref<2x8xi32, #tpu.memory_space<smem>>
    %55 = arith.index_cast %54 : i32 to index
    %c0_46 = arith.constant 0 : index
    %56 = vector.load %arg12[%55, %c0_46] : memref<16x128xf32, #tpu.memory_space<vmem>>, vector<1x128xf32>
    %57 = tpu.concatenate %53, %56 in 0 : vector<1x128xf32>, vector<1x128xf32> -> vector<2x128xf32>
    %cst_47 = arith.constant dense<0.000000e+00> : vector<2x128xf32>
    %58 = tpu.matmul %50, %12, %cst_47 {dimension_numbers = #tpu.dot_dimension_numbers<[1], [0], [0], [1], [0, 0, 1, 1], [], []>} : vector<2x32xf32>, vector<32x128xf32>, vector<2x128xf32> -> vector<2x128xf32>
    %59 = arith.addf %57, %58 : vector<2x128xf32>
    %60 = arith.negf %59 : vector<2x128xf32>
    %61 = math.exp %60 : vector<2x128xf32>
    %cst_48 = arith.constant 1.000000e+00 : f32
    %62 = vector.broadcast %cst_48 : f32 to vector<2x128xf32>
    %63 = arith.addf %62, %61 : vector<2x128xf32>
    %64 = arith.divf %62, %63 : vector<2x128xf32>
    %65 = math.tanh %59 : vector<2x128xf32>
    %66 = vector.extract_strided_slice %64 {offsets = [0, 0], sizes = [2, 32], strides = [1, 1]} : vector<2x128xf32> to vector<2x32xf32>
    %67 = vector.extract_strided_slice %64 {offsets = [0, 32], sizes = [2, 32], strides = [1, 1]} : vector<2x128xf32> to vector<2x32xf32>
    %68 = vector.extract_strided_slice %65 {offsets = [0, 64], sizes = [2, 32], strides = [1, 1]} : vector<2x128xf32> to vector<2x32xf32>
    %69 = vector.extract_strided_slice %64 {offsets = [0, 96], sizes = [2, 32], strides = [1, 1]} : vector<2x128xf32> to vector<2x32xf32>
    %70 = arith.mulf %67, %48 : vector<2x32xf32>
    %71 = arith.mulf %66, %68 : vector<2x32xf32>
    %72 = arith.addf %70, %71 : vector<2x32xf32>
    %73 = math.tanh %72 : vector<2x32xf32>
    %74 = arith.mulf %69, %73 : vector<2x32xf32>
    %cst_49 = arith.constant dense<0.000000e+00> : vector<2x128xf32>
    %75 = tpu.matmul %50, %16, %cst_49 {dimension_numbers = #tpu.dot_dimension_numbers<[1], [0], [0], [1], [0, 0, 1, 1], [], []>} : vector<2x32xf32>, vector<32x128xf32>, vector<2x128xf32> -> vector<2x128xf32>
    %76 = vector.broadcast %18 : vector<1x128xf32> to vector<2x128xf32>
    %77 = arith.addf %75, %76 : vector<2x128xf32>
    %cst_50 = arith.constant dense<0.000000e+00> : vector<2x128xf32>
    %78 = tpu.matmul %22, %14, %cst_50 {dimension_numbers = #tpu.dot_dimension_numbers<[1], [0], [0], [1], [0, 0, 1, 1], [], []>} : vector<2x32xf32>, vector<32x128xf32>, vector<2x128xf32> -> vector<2x128xf32>
    %79 = arith.addf %77, %78 : vector<2x128xf32>
    %80 = arith.negf %79 : vector<2x128xf32>
    %81 = math.exp %80 : vector<2x128xf32>
    %cst_51 = arith.constant 1.000000e+00 : f32
    %82 = vector.broadcast %cst_51 : f32 to vector<2x128xf32>
    %83 = arith.addf %82, %81 : vector<2x128xf32>
    %84 = arith.divf %82, %83 : vector<2x128xf32>
    %85 = math.tanh %79 : vector<2x128xf32>
    %86 = vector.extract_strided_slice %84 {offsets = [0, 0], sizes = [2, 32], strides = [1, 1]} : vector<2x128xf32> to vector<2x32xf32>
    %87 = vector.extract_strided_slice %84 {offsets = [0, 32], sizes = [2, 32], strides = [1, 1]} : vector<2x128xf32> to vector<2x32xf32>
    %88 = vector.extract_strided_slice %85 {offsets = [0, 64], sizes = [2, 32], strides = [1, 1]} : vector<2x128xf32> to vector<2x32xf32>
    %89 = vector.extract_strided_slice %84 {offsets = [0, 96], sizes = [2, 32], strides = [1, 1]} : vector<2x128xf32> to vector<2x32xf32>
    %90 = arith.mulf %87, %26 : vector<2x32xf32>
    %91 = arith.mulf %86, %88 : vector<2x32xf32>
    %92 = arith.addf %90, %91 : vector<2x32xf32>
    %93 = math.tanh %92 : vector<2x32xf32>
    %94 = arith.mulf %89, %93 : vector<2x32xf32>
    %c0_52 = arith.constant 0 : index
    %c2 = arith.constant 2 : index
    %95 = memref.load %arg0[%c0_52, %c2] : memref<2x8xi32, #tpu.memory_space<smem>>
    %96 = arith.index_cast %95 : i32 to index
    %c0_53 = arith.constant 0 : index
    %97 = vector.load %arg12[%96, %c0_53] : memref<16x128xf32, #tpu.memory_space<vmem>>, vector<1x128xf32>
    %c1_54 = arith.constant 1 : index
    %c2_55 = arith.constant 2 : index
    %98 = memref.load %arg0[%c1_54, %c2_55] : memref<2x8xi32, #tpu.memory_space<smem>>
    %99 = arith.index_cast %98 : i32 to index
    %c0_56 = arith.constant 0 : index
    %100 = vector.load %arg12[%99, %c0_56] : memref<16x128xf32, #tpu.memory_space<vmem>>, vector<1x128xf32>
    %101 = tpu.concatenate %97, %100 in 0 : vector<1x128xf32>, vector<1x128xf32> -> vector<2x128xf32>
    %cst_57 = arith.constant dense<0.000000e+00> : vector<2x128xf32>
    %102 = tpu.matmul %74, %12, %cst_57 {dimension_numbers = #tpu.dot_dimension_numbers<[1], [0], [0], [1], [0, 0, 1, 1], [], []>} : vector<2x32xf32>, vector<32x128xf32>, vector<2x128xf32> -> vector<2x128xf32>
    %103 = arith.addf %101, %102 : vector<2x128xf32>
    %104 = arith.negf %103 : vector<2x128xf32>
    %105 = math.exp %104 : vector<2x128xf32>
    %cst_58 = arith.constant 1.000000e+00 : f32
    %106 = vector.broadcast %cst_58 : f32 to vector<2x128xf32>
    %107 = arith.addf %106, %105 : vector<2x128xf32>
    %108 = arith.divf %106, %107 : vector<2x128xf32>
    %109 = math.tanh %103 : vector<2x128xf32>
    %110 = vector.extract_strided_slice %108 {offsets = [0, 0], sizes = [2, 32], strides = [1, 1]} : vector<2x128xf32> to vector<2x32xf32>
    %111 = vector.extract_strided_slice %108 {offsets = [0, 32], sizes = [2, 32], strides = [1, 1]} : vector<2x128xf32> to vector<2x32xf32>
    %112 = vector.extract_strided_slice %109 {offsets = [0, 64], sizes = [2, 32], strides = [1, 1]} : vector<2x128xf32> to vector<2x32xf32>
    %113 = vector.extract_strided_slice %108 {offsets = [0, 96], sizes = [2, 32], strides = [1, 1]} : vector<2x128xf32> to vector<2x32xf32>
    %114 = arith.mulf %111, %72 : vector<2x32xf32>
    %115 = arith.mulf %110, %112 : vector<2x32xf32>
    %116 = arith.addf %114, %115 : vector<2x32xf32>
    %117 = math.tanh %116 : vector<2x32xf32>
    %118 = arith.mulf %113, %117 : vector<2x32xf32>
    %cst_59 = arith.constant dense<0.000000e+00> : vector<2x128xf32>
    %119 = tpu.matmul %74, %16, %cst_59 {dimension_numbers = #tpu.dot_dimension_numbers<[1], [0], [0], [1], [0, 0, 1, 1], [], []>} : vector<2x32xf32>, vector<32x128xf32>, vector<2x128xf32> -> vector<2x128xf32>
    %120 = vector.broadcast %18 : vector<1x128xf32> to vector<2x128xf32>
    %121 = arith.addf %119, %120 : vector<2x128xf32>
    %cst_60 = arith.constant dense<0.000000e+00> : vector<2x128xf32>
    %122 = tpu.matmul %94, %14, %cst_60 {dimension_numbers = #tpu.dot_dimension_numbers<[1], [0], [0], [1], [0, 0, 1, 1], [], []>} : vector<2x32xf32>, vector<32x128xf32>, vector<2x128xf32> -> vector<2x128xf32>
    %123 = arith.addf %121, %122 : vector<2x128xf32>
    %124 = arith.negf %123 : vector<2x128xf32>
    %125 = math.exp %124 : vector<2x128xf32>
    %cst_61 = arith.constant 1.000000e+00 : f32
    %126 = vector.broadcast %cst_61 : f32 to vector<2x128xf32>
    %127 = arith.addf %126, %125 : vector<2x128xf32>
    %128 = arith.divf %126, %127 : vector<2x128xf32>
    %129 = math.tanh %123 : vector<2x128xf32>
    %130 = vector.extract_strided_slice %128 {offsets = [0, 0], sizes = [2, 32], strides = [1, 1]} : vector<2x128xf32> to vector<2x32xf32>
    %131 = vector.extract_strided_slice %128 {offsets = [0, 32], sizes = [2, 32], strides = [1, 1]} : vector<2x128xf32> to vector<2x32xf32>
    %132 = vector.extract_strided_slice %129 {offsets = [0, 64], sizes = [2, 32], strides = [1, 1]} : vector<2x128xf32> to vector<2x32xf32>
    %133 = vector.extract_strided_slice %128 {offsets = [0, 96], sizes = [2, 32], strides = [1, 1]} : vector<2x128xf32> to vector<2x32xf32>
    %134 = arith.mulf %131, %92 : vector<2x32xf32>
    %135 = arith.mulf %130, %132 : vector<2x32xf32>
    %136 = arith.addf %134, %135 : vector<2x32xf32>
    %137 = math.tanh %136 : vector<2x32xf32>
    %138 = arith.mulf %133, %137 : vector<2x32xf32>
    %c0_62 = arith.constant 0 : index
    %c3 = arith.constant 3 : index
    %139 = memref.load %arg0[%c0_62, %c3] : memref<2x8xi32, #tpu.memory_space<smem>>
    %140 = arith.index_cast %139 : i32 to index
    %c0_63 = arith.constant 0 : index
    %141 = vector.load %arg12[%140, %c0_63] : memref<16x128xf32, #tpu.memory_space<vmem>>, vector<1x128xf32>
    %c1_64 = arith.constant 1 : index
    %c3_65 = arith.constant 3 : index
    %142 = memref.load %arg0[%c1_64, %c3_65] : memref<2x8xi32, #tpu.memory_space<smem>>
    %143 = arith.index_cast %142 : i32 to index
    %c0_66 = arith.constant 0 : index
    %144 = vector.load %arg12[%143, %c0_66] : memref<16x128xf32, #tpu.memory_space<vmem>>, vector<1x128xf32>
    %145 = tpu.concatenate %141, %144 in 0 : vector<1x128xf32>, vector<1x128xf32> -> vector<2x128xf32>
    %cst_67 = arith.constant dense<0.000000e+00> : vector<2x128xf32>
    %146 = tpu.matmul %118, %12, %cst_67 {dimension_numbers = #tpu.dot_dimension_numbers<[1], [0], [0], [1], [0, 0, 1, 1], [], []>} : vector<2x32xf32>, vector<32x128xf32>, vector<2x128xf32> -> vector<2x128xf32>
    %147 = arith.addf %145, %146 : vector<2x128xf32>
    %148 = arith.negf %147 : vector<2x128xf32>
    %149 = math.exp %148 : vector<2x128xf32>
    %cst_68 = arith.constant 1.000000e+00 : f32
    %150 = vector.broadcast %cst_68 : f32 to vector<2x128xf32>
    %151 = arith.addf %150, %149 : vector<2x128xf32>
    %152 = arith.divf %150, %151 : vector<2x128xf32>
    %153 = math.tanh %147 : vector<2x128xf32>
    %154 = vector.extract_strided_slice %152 {offsets = [0, 0], sizes = [2, 32], strides = [1, 1]} : vector<2x128xf32> to vector<2x32xf32>
    %155 = vector.extract_strided_slice %152 {offsets = [0, 32], sizes = [2, 32], strides = [1, 1]} : vector<2x128xf32> to vector<2x32xf32>
    %156 = vector.extract_strided_slice %153 {offsets = [0, 64], sizes = [2, 32], strides = [1, 1]} : vector<2x128xf32> to vector<2x32xf32>
    %157 = vector.extract_strided_slice %152 {offsets = [0, 96], sizes = [2, 32], strides = [1, 1]} : vector<2x128xf32> to vector<2x32xf32>
    %158 = arith.mulf %155, %116 : vector<2x32xf32>
    %159 = arith.mulf %154, %156 : vector<2x32xf32>
    %160 = arith.addf %158, %159 : vector<2x32xf32>
    %161 = math.tanh %160 : vector<2x32xf32>
    %162 = arith.mulf %157, %161 : vector<2x32xf32>
    %cst_69 = arith.constant dense<0.000000e+00> : vector<2x128xf32>
    %163 = tpu.matmul %118, %16, %cst_69 {dimension_numbers = #tpu.dot_dimension_numbers<[1], [0], [0], [1], [0, 0, 1, 1], [], []>} : vector<2x32xf32>, vector<32x128xf32>, vector<2x128xf32> -> vector<2x128xf32>
    %164 = vector.broadcast %18 : vector<1x128xf32> to vector<2x128xf32>
    %165 = arith.addf %163, %164 : vector<2x128xf32>
    %cst_70 = arith.constant dense<0.000000e+00> : vector<2x128xf32>
    %166 = tpu.matmul %138, %14, %cst_70 {dimension_numbers = #tpu.dot_dimension_numbers<[1], [0], [0], [1], [0, 0, 1, 1], [], []>} : vector<2x32xf32>, vector<32x128xf32>, vector<2x128xf32> -> vector<2x128xf32>
    %167 = arith.addf %165, %166 : vector<2x128xf32>
    %168 = arith.negf %167 : vector<2x128xf32>
    %169 = math.exp %168 : vector<2x128xf32>
    %cst_71 = arith.constant 1.000000e+00 : f32
    %170 = vector.broadcast %cst_71 : f32 to vector<2x128xf32>
    %171 = arith.addf %170, %169 : vector<2x128xf32>
    %172 = arith.divf %170, %171 : vector<2x128xf32>
    %173 = math.tanh %167 : vector<2x128xf32>
    %174 = vector.extract_strided_slice %172 {offsets = [0, 0], sizes = [2, 32], strides = [1, 1]} : vector<2x128xf32> to vector<2x32xf32>
    %175 = vector.extract_strided_slice %172 {offsets = [0, 32], sizes = [2, 32], strides = [1, 1]} : vector<2x128xf32> to vector<2x32xf32>
    %176 = vector.extract_strided_slice %173 {offsets = [0, 64], sizes = [2, 32], strides = [1, 1]} : vector<2x128xf32> to vector<2x32xf32>
    %177 = vector.extract_strided_slice %172 {offsets = [0, 96], sizes = [2, 32], strides = [1, 1]} : vector<2x128xf32> to vector<2x32xf32>
    %178 = arith.mulf %175, %136 : vector<2x32xf32>
    %179 = arith.mulf %174, %176 : vector<2x32xf32>
    %180 = arith.addf %178, %179 : vector<2x32xf32>
    %181 = math.tanh %180 : vector<2x32xf32>
    %182 = arith.mulf %177, %181 : vector<2x32xf32>
    %c0_72 = arith.constant 0 : index
    %c4 = arith.constant 4 : index
    %183 = memref.load %arg0[%c0_72, %c4] : memref<2x8xi32, #tpu.memory_space<smem>>
    %184 = arith.index_cast %183 : i32 to index
    %c0_73 = arith.constant 0 : index
    %185 = vector.load %arg12[%184, %c0_73] : memref<16x128xf32, #tpu.memory_space<vmem>>, vector<1x128xf32>
    %c1_74 = arith.constant 1 : index
    %c4_75 = arith.constant 4 : index
    %186 = memref.load %arg0[%c1_74, %c4_75] : memref<2x8xi32, #tpu.memory_space<smem>>
    %187 = arith.index_cast %186 : i32 to index
    %c0_76 = arith.constant 0 : index
    %188 = vector.load %arg12[%187, %c0_76] : memref<16x128xf32, #tpu.memory_space<vmem>>, vector<1x128xf32>
    %189 = tpu.concatenate %185, %188 in 0 : vector<1x128xf32>, vector<1x128xf32> -> vector<2x128xf32>
    %cst_77 = arith.constant dense<0.000000e+00> : vector<2x128xf32>
    %190 = tpu.matmul %162, %12, %cst_77 {dimension_numbers = #tpu.dot_dimension_numbers<[1], [0], [0], [1], [0, 0, 1, 1], [], []>} : vector<2x32xf32>, vector<32x128xf32>, vector<2x128xf32> -> vector<2x128xf32>
    %191 = arith.addf %189, %190 : vector<2x128xf32>
    %192 = arith.negf %191 : vector<2x128xf32>
    %193 = math.exp %192 : vector<2x128xf32>
    %cst_78 = arith.constant 1.000000e+00 : f32
    %194 = vector.broadcast %cst_78 : f32 to vector<2x128xf32>
    %195 = arith.addf %194, %193 : vector<2x128xf32>
    %196 = arith.divf %194, %195 : vector<2x128xf32>
    %197 = math.tanh %191 : vector<2x128xf32>
    %198 = vector.extract_strided_slice %196 {offsets = [0, 0], sizes = [2, 32], strides = [1, 1]} : vector<2x128xf32> to vector<2x32xf32>
    %199 = vector.extract_strided_slice %196 {offsets = [0, 32], sizes = [2, 32], strides = [1, 1]} : vector<2x128xf32> to vector<2x32xf32>
    %200 = vector.extract_strided_slice %197 {offsets = [0, 64], sizes = [2, 32], strides = [1, 1]} : vector<2x128xf32> to vector<2x32xf32>
    %201 = vector.extract_strided_slice %196 {offsets = [0, 96], sizes = [2, 32], strides = [1, 1]} : vector<2x128xf32> to vector<2x32xf32>
    %202 = arith.mulf %199, %160 : vector<2x32xf32>
    %203 = arith.mulf %198, %200 : vector<2x32xf32>
    %204 = arith.addf %202, %203 : vector<2x32xf32>
    %205 = math.tanh %204 : vector<2x32xf32>
    %206 = arith.mulf %201, %205 : vector<2x32xf32>
    %cst_79 = arith.constant dense<0.000000e+00> : vector<2x128xf32>
    %207 = tpu.matmul %162, %16, %cst_79 {dimension_numbers = #tpu.dot_dimension_numbers<[1], [0], [0], [1], [0, 0, 1, 1], [], []>} : vector<2x32xf32>, vector<32x128xf32>, vector<2x128xf32> -> vector<2x128xf32>
    %208 = vector.broadcast %18 : vector<1x128xf32> to vector<2x128xf32>
    %209 = arith.addf %207, %208 : vector<2x128xf32>
    %cst_80 = arith.constant dense<0.000000e+00> : vector<2x128xf32>
    %210 = tpu.matmul %182, %14, %cst_80 {dimension_numbers = #tpu.dot_dimension_numbers<[1], [0], [0], [1], [0, 0, 1, 1], [], []>} : vector<2x32xf32>, vector<32x128xf32>, vector<2x128xf32> -> vector<2x128xf32>
    %211 = arith.addf %209, %210 : vector<2x128xf32>
    %212 = arith.negf %211 : vector<2x128xf32>
    %213 = math.exp %212 : vector<2x128xf32>
    %cst_81 = arith.constant 1.000000e+00 : f32
    %214 = vector.broadcast %cst_81 : f32 to vector<2x128xf32>
    %215 = arith.addf %214, %213 : vector<2x128xf32>
    %216 = arith.divf %214, %215 : vector<2x128xf32>
    %217 = math.tanh %211 : vector<2x128xf32>
    %218 = vector.extract_strided_slice %216 {offsets = [0, 0], sizes = [2, 32], strides = [1, 1]} : vector<2x128xf32> to vector<2x32xf32>
    %219 = vector.extract_strided_slice %216 {offsets = [0, 32], sizes = [2, 32], strides = [1, 1]} : vector<2x128xf32> to vector<2x32xf32>
    %220 = vector.extract_strided_slice %217 {offsets = [0, 64], sizes = [2, 32], strides = [1, 1]} : vector<2x128xf32> to vector<2x32xf32>
    %221 = vector.extract_strided_slice %216 {offsets = [0, 96], sizes = [2, 32], strides = [1, 1]} : vector<2x128xf32> to vector<2x32xf32>
    %222 = arith.mulf %219, %180 : vector<2x32xf32>
    %223 = arith.mulf %218, %220 : vector<2x32xf32>
    %224 = arith.addf %222, %223 : vector<2x32xf32>
    %225 = math.tanh %224 : vector<2x32xf32>
    %226 = arith.mulf %221, %225 : vector<2x32xf32>
    %c0_82 = arith.constant 0 : index
    %c5 = arith.constant 5 : index
    %227 = memref.load %arg0[%c0_82, %c5] : memref<2x8xi32, #tpu.memory_space<smem>>
    %228 = arith.index_cast %227 : i32 to index
    %c0_83 = arith.constant 0 : index
    %229 = vector.load %arg12[%228, %c0_83] : memref<16x128xf32, #tpu.memory_space<vmem>>, vector<1x128xf32>
    %c1_84 = arith.constant 1 : index
    %c5_85 = arith.constant 5 : index
    %230 = memref.load %arg0[%c1_84, %c5_85] : memref<2x8xi32, #tpu.memory_space<smem>>
    %231 = arith.index_cast %230 : i32 to index
    %c0_86 = arith.constant 0 : index
    %232 = vector.load %arg12[%231, %c0_86] : memref<16x128xf32, #tpu.memory_space<vmem>>, vector<1x128xf32>
    %233 = tpu.concatenate %229, %232 in 0 : vector<1x128xf32>, vector<1x128xf32> -> vector<2x128xf32>
    %cst_87 = arith.constant dense<0.000000e+00> : vector<2x128xf32>
    %234 = tpu.matmul %206, %12, %cst_87 {dimension_numbers = #tpu.dot_dimension_numbers<[1], [0], [0], [1], [0, 0, 1, 1], [], []>} : vector<2x32xf32>, vector<32x128xf32>, vector<2x128xf32> -> vector<2x128xf32>
    %235 = arith.addf %233, %234 : vector<2x128xf32>
    %236 = arith.negf %235 : vector<2x128xf32>
    %237 = math.exp %236 : vector<2x128xf32>
    %cst_88 = arith.constant 1.000000e+00 : f32
    %238 = vector.broadcast %cst_88 : f32 to vector<2x128xf32>
    %239 = arith.addf %238, %237 : vector<2x128xf32>
    %240 = arith.divf %238, %239 : vector<2x128xf32>
    %241 = math.tanh %235 : vector<2x128xf32>
    %242 = vector.extract_strided_slice %240 {offsets = [0, 0], sizes = [2, 32], strides = [1, 1]} : vector<2x128xf32> to vector<2x32xf32>
    %243 = vector.extract_strided_slice %240 {offsets = [0, 32], sizes = [2, 32], strides = [1, 1]} : vector<2x128xf32> to vector<2x32xf32>
    %244 = vector.extract_strided_slice %241 {offsets = [0, 64], sizes = [2, 32], strides = [1, 1]} : vector<2x128xf32> to vector<2x32xf32>
    %245 = vector.extract_strided_slice %240 {offsets = [0, 96], sizes = [2, 32], strides = [1, 1]} : vector<2x128xf32> to vector<2x32xf32>
    %246 = arith.mulf %243, %204 : vector<2x32xf32>
    %247 = arith.mulf %242, %244 : vector<2x32xf32>
    %248 = arith.addf %246, %247 : vector<2x32xf32>
    %249 = math.tanh %248 : vector<2x32xf32>
    %250 = arith.mulf %245, %249 : vector<2x32xf32>
    %cst_89 = arith.constant dense<0.000000e+00> : vector<2x128xf32>
    %251 = tpu.matmul %206, %16, %cst_89 {dimension_numbers = #tpu.dot_dimension_numbers<[1], [0], [0], [1], [0, 0, 1, 1], [], []>} : vector<2x32xf32>, vector<32x128xf32>, vector<2x128xf32> -> vector<2x128xf32>
    %252 = vector.broadcast %18 : vector<1x128xf32> to vector<2x128xf32>
    %253 = arith.addf %251, %252 : vector<2x128xf32>
    %cst_90 = arith.constant dense<0.000000e+00> : vector<2x128xf32>
    %254 = tpu.matmul %226, %14, %cst_90 {dimension_numbers = #tpu.dot_dimension_numbers<[1], [0], [0], [1], [0, 0, 1, 1], [], []>} : vector<2x32xf32>, vector<32x128xf32>, vector<2x128xf32> -> vector<2x128xf32>
    %255 = arith.addf %253, %254 : vector<2x128xf32>
    %256 = arith.negf %255 : vector<2x128xf32>
    %257 = math.exp %256 : vector<2x128xf32>
    %cst_91 = arith.constant 1.000000e+00 : f32
    %258 = vector.broadcast %cst_91 : f32 to vector<2x128xf32>
    %259 = arith.addf %258, %257 : vector<2x128xf32>
    %260 = arith.divf %258, %259 : vector<2x128xf32>
    %261 = math.tanh %255 : vector<2x128xf32>
    %262 = vector.extract_strided_slice %260 {offsets = [0, 0], sizes = [2, 32], strides = [1, 1]} : vector<2x128xf32> to vector<2x32xf32>
    %263 = vector.extract_strided_slice %260 {offsets = [0, 32], sizes = [2, 32], strides = [1, 1]} : vector<2x128xf32> to vector<2x32xf32>
    %264 = vector.extract_strided_slice %261 {offsets = [0, 64], sizes = [2, 32], strides = [1, 1]} : vector<2x128xf32> to vector<2x32xf32>
    %265 = vector.extract_strided_slice %260 {offsets = [0, 96], sizes = [2, 32], strides = [1, 1]} : vector<2x128xf32> to vector<2x32xf32>
    %266 = arith.mulf %263, %224 : vector<2x32xf32>
    %267 = arith.mulf %262, %264 : vector<2x32xf32>
    %268 = arith.addf %266, %267 : vector<2x32xf32>
    %269 = math.tanh %268 : vector<2x32xf32>
    %270 = arith.mulf %265, %269 : vector<2x32xf32>
    %c0_92 = arith.constant 0 : index
    %c6 = arith.constant 6 : index
    %271 = memref.load %arg0[%c0_92, %c6] : memref<2x8xi32, #tpu.memory_space<smem>>
    %272 = arith.index_cast %271 : i32 to index
    %c0_93 = arith.constant 0 : index
    %273 = vector.load %arg12[%272, %c0_93] : memref<16x128xf32, #tpu.memory_space<vmem>>, vector<1x128xf32>
    %c1_94 = arith.constant 1 : index
    %c6_95 = arith.constant 6 : index
    %274 = memref.load %arg0[%c1_94, %c6_95] : memref<2x8xi32, #tpu.memory_space<smem>>
    %275 = arith.index_cast %274 : i32 to index
    %c0_96 = arith.constant 0 : index
    %276 = vector.load %arg12[%275, %c0_96] : memref<16x128xf32, #tpu.memory_space<vmem>>, vector<1x128xf32>
    %277 = tpu.concatenate %273, %276 in 0 : vector<1x128xf32>, vector<1x128xf32> -> vector<2x128xf32>
    %cst_97 = arith.constant dense<0.000000e+00> : vector<2x128xf32>
    %278 = tpu.matmul %250, %12, %cst_97 {dimension_numbers = #tpu.dot_dimension_numbers<[1], [0], [0], [1], [0, 0, 1, 1], [], []>} : vector<2x32xf32>, vector<32x128xf32>, vector<2x128xf32> -> vector<2x128xf32>
    %279 = arith.addf %277, %278 : vector<2x128xf32>
    %280 = arith.negf %279 : vector<2x128xf32>
    %281 = math.exp %280 : vector<2x128xf32>
    %cst_98 = arith.constant 1.000000e+00 : f32
    %282 = vector.broadcast %cst_98 : f32 to vector<2x128xf32>
    %283 = arith.addf %282, %281 : vector<2x128xf32>
    %284 = arith.divf %282, %283 : vector<2x128xf32>
    %285 = math.tanh %279 : vector<2x128xf32>
    %286 = vector.extract_strided_slice %284 {offsets = [0, 0], sizes = [2, 32], strides = [1, 1]} : vector<2x128xf32> to vector<2x32xf32>
    %287 = vector.extract_strided_slice %284 {offsets = [0, 32], sizes = [2, 32], strides = [1, 1]} : vector<2x128xf32> to vector<2x32xf32>
    %288 = vector.extract_strided_slice %285 {offsets = [0, 64], sizes = [2, 32], strides = [1, 1]} : vector<2x128xf32> to vector<2x32xf32>
    %289 = vector.extract_strided_slice %284 {offsets = [0, 96], sizes = [2, 32], strides = [1, 1]} : vector<2x128xf32> to vector<2x32xf32>
    %290 = arith.mulf %287, %248 : vector<2x32xf32>
    %291 = arith.mulf %286, %288 : vector<2x32xf32>
    %292 = arith.addf %290, %291 : vector<2x32xf32>
    %293 = math.tanh %292 : vector<2x32xf32>
    %294 = arith.mulf %289, %293 : vector<2x32xf32>
    %cst_99 = arith.constant dense<0.000000e+00> : vector<2x128xf32>
    %295 = tpu.matmul %250, %16, %cst_99 {dimension_numbers = #tpu.dot_dimension_numbers<[1], [0], [0], [1], [0, 0, 1, 1], [], []>} : vector<2x32xf32>, vector<32x128xf32>, vector<2x128xf32> -> vector<2x128xf32>
    %296 = vector.broadcast %18 : vector<1x128xf32> to vector<2x128xf32>
    %297 = arith.addf %295, %296 : vector<2x128xf32>
    %cst_100 = arith.constant dense<0.000000e+00> : vector<2x128xf32>
    %298 = tpu.matmul %270, %14, %cst_100 {dimension_numbers = #tpu.dot_dimension_numbers<[1], [0], [0], [1], [0, 0, 1, 1], [], []>} : vector<2x32xf32>, vector<32x128xf32>, vector<2x128xf32> -> vector<2x128xf32>
    %299 = arith.addf %297, %298 : vector<2x128xf32>
    %300 = arith.negf %299 : vector<2x128xf32>
    %301 = math.exp %300 : vector<2x128xf32>
    %cst_101 = arith.constant 1.000000e+00 : f32
    %302 = vector.broadcast %cst_101 : f32 to vector<2x128xf32>
    %303 = arith.addf %302, %301 : vector<2x128xf32>
    %304 = arith.divf %302, %303 : vector<2x128xf32>
    %305 = math.tanh %299 : vector<2x128xf32>
    %306 = vector.extract_strided_slice %304 {offsets = [0, 0], sizes = [2, 32], strides = [1, 1]} : vector<2x128xf32> to vector<2x32xf32>
    %307 = vector.extract_strided_slice %304 {offsets = [0, 32], sizes = [2, 32], strides = [1, 1]} : vector<2x128xf32> to vector<2x32xf32>
    %308 = vector.extract_strided_slice %305 {offsets = [0, 64], sizes = [2, 32], strides = [1, 1]} : vector<2x128xf32> to vector<2x32xf32>
    %309 = vector.extract_strided_slice %304 {offsets = [0, 96], sizes = [2, 32], strides = [1, 1]} : vector<2x128xf32> to vector<2x32xf32>
    %310 = arith.mulf %307, %268 : vector<2x32xf32>
    %311 = arith.mulf %306, %308 : vector<2x32xf32>
    %312 = arith.addf %310, %311 : vector<2x32xf32>
    %313 = math.tanh %312 : vector<2x32xf32>
    %314 = arith.mulf %309, %313 : vector<2x32xf32>
    %c0_102 = arith.constant 0 : index
    %c7 = arith.constant 7 : index
    %315 = memref.load %arg0[%c0_102, %c7] : memref<2x8xi32, #tpu.memory_space<smem>>
    %316 = arith.index_cast %315 : i32 to index
    %c0_103 = arith.constant 0 : index
    %317 = vector.load %arg12[%316, %c0_103] : memref<16x128xf32, #tpu.memory_space<vmem>>, vector<1x128xf32>
    %c1_104 = arith.constant 1 : index
    %c7_105 = arith.constant 7 : index
    %318 = memref.load %arg0[%c1_104, %c7_105] : memref<2x8xi32, #tpu.memory_space<smem>>
    %319 = arith.index_cast %318 : i32 to index
    %c0_106 = arith.constant 0 : index
    %320 = vector.load %arg12[%319, %c0_106] : memref<16x128xf32, #tpu.memory_space<vmem>>, vector<1x128xf32>
    %321 = tpu.concatenate %317, %320 in 0 : vector<1x128xf32>, vector<1x128xf32> -> vector<2x128xf32>
    %cst_107 = arith.constant dense<0.000000e+00> : vector<2x128xf32>
    %322 = tpu.matmul %294, %12, %cst_107 {dimension_numbers = #tpu.dot_dimension_numbers<[1], [0], [0], [1], [0, 0, 1, 1], [], []>} : vector<2x32xf32>, vector<32x128xf32>, vector<2x128xf32> -> vector<2x128xf32>
    %323 = arith.addf %321, %322 : vector<2x128xf32>
    %324 = arith.negf %323 : vector<2x128xf32>
    %325 = math.exp %324 : vector<2x128xf32>
    %cst_108 = arith.constant 1.000000e+00 : f32
    %326 = vector.broadcast %cst_108 : f32 to vector<2x128xf32>
    %327 = arith.addf %326, %325 : vector<2x128xf32>
    %328 = arith.divf %326, %327 : vector<2x128xf32>
    %329 = math.tanh %323 : vector<2x128xf32>
    %330 = vector.extract_strided_slice %328 {offsets = [0, 0], sizes = [2, 32], strides = [1, 1]} : vector<2x128xf32> to vector<2x32xf32>
    %331 = vector.extract_strided_slice %328 {offsets = [0, 32], sizes = [2, 32], strides = [1, 1]} : vector<2x128xf32> to vector<2x32xf32>
    %332 = vector.extract_strided_slice %329 {offsets = [0, 64], sizes = [2, 32], strides = [1, 1]} : vector<2x128xf32> to vector<2x32xf32>
    %333 = vector.extract_strided_slice %328 {offsets = [0, 96], sizes = [2, 32], strides = [1, 1]} : vector<2x128xf32> to vector<2x32xf32>
    %334 = arith.mulf %331, %292 : vector<2x32xf32>
    %335 = arith.mulf %330, %332 : vector<2x32xf32>
    %336 = arith.addf %334, %335 : vector<2x32xf32>
    %337 = math.tanh %336 : vector<2x32xf32>
    %338 = arith.mulf %333, %337 : vector<2x32xf32>
    %cst_109 = arith.constant dense<0.000000e+00> : vector<2x128xf32>
    %339 = tpu.matmul %294, %16, %cst_109 {dimension_numbers = #tpu.dot_dimension_numbers<[1], [0], [0], [1], [0, 0, 1, 1], [], []>} : vector<2x32xf32>, vector<32x128xf32>, vector<2x128xf32> -> vector<2x128xf32>
    %340 = vector.broadcast %18 : vector<1x128xf32> to vector<2x128xf32>
    %341 = arith.addf %339, %340 : vector<2x128xf32>
    %cst_110 = arith.constant dense<0.000000e+00> : vector<2x128xf32>
    %342 = tpu.matmul %314, %14, %cst_110 {dimension_numbers = #tpu.dot_dimension_numbers<[1], [0], [0], [1], [0, 0, 1, 1], [], []>} : vector<2x32xf32>, vector<32x128xf32>, vector<2x128xf32> -> vector<2x128xf32>
    %343 = arith.addf %341, %342 : vector<2x128xf32>
    %344 = arith.negf %343 : vector<2x128xf32>
    %345 = math.exp %344 : vector<2x128xf32>
    %cst_111 = arith.constant 1.000000e+00 : f32
    %346 = vector.broadcast %cst_111 : f32 to vector<2x128xf32>
    %347 = arith.addf %346, %345 : vector<2x128xf32>
    %348 = arith.divf %346, %347 : vector<2x128xf32>
    %349 = math.tanh %343 : vector<2x128xf32>
    %350 = vector.extract_strided_slice %348 {offsets = [0, 0], sizes = [2, 32], strides = [1, 1]} : vector<2x128xf32> to vector<2x32xf32>
    %351 = vector.extract_strided_slice %348 {offsets = [0, 32], sizes = [2, 32], strides = [1, 1]} : vector<2x128xf32> to vector<2x32xf32>
    %352 = vector.extract_strided_slice %349 {offsets = [0, 64], sizes = [2, 32], strides = [1, 1]} : vector<2x128xf32> to vector<2x32xf32>
    %353 = vector.extract_strided_slice %348 {offsets = [0, 96], sizes = [2, 32], strides = [1, 1]} : vector<2x128xf32> to vector<2x32xf32>
    %354 = arith.mulf %351, %312 : vector<2x32xf32>
    %355 = arith.mulf %350, %352 : vector<2x32xf32>
    %356 = arith.addf %354, %355 : vector<2x32xf32>
    %357 = math.tanh %356 : vector<2x32xf32>
    %358 = arith.mulf %353, %357 : vector<2x32xf32>
    %cst_112 = arith.constant dense<0.000000e+00> : vector<2x128xf32>
    %359 = tpu.matmul %338, %16, %cst_112 {dimension_numbers = #tpu.dot_dimension_numbers<[1], [0], [0], [1], [0, 0, 1, 1], [], []>} : vector<2x32xf32>, vector<32x128xf32>, vector<2x128xf32> -> vector<2x128xf32>
    %360 = vector.broadcast %18 : vector<1x128xf32> to vector<2x128xf32>
    %361 = arith.addf %359, %360 : vector<2x128xf32>
    %cst_113 = arith.constant dense<0.000000e+00> : vector<2x128xf32>
    %362 = tpu.matmul %358, %14, %cst_113 {dimension_numbers = #tpu.dot_dimension_numbers<[1], [0], [0], [1], [0, 0, 1, 1], [], []>} : vector<2x32xf32>, vector<32x128xf32>, vector<2x128xf32> -> vector<2x128xf32>
    %363 = arith.addf %361, %362 : vector<2x128xf32>
    %364 = arith.negf %363 : vector<2x128xf32>
    %365 = math.exp %364 : vector<2x128xf32>
    %cst_114 = arith.constant 1.000000e+00 : f32
    %366 = vector.broadcast %cst_114 : f32 to vector<2x128xf32>
    %367 = arith.addf %366, %365 : vector<2x128xf32>
    %368 = arith.divf %366, %367 : vector<2x128xf32>
    %369 = math.tanh %363 : vector<2x128xf32>
    %370 = vector.extract_strided_slice %368 {offsets = [0, 0], sizes = [2, 32], strides = [1, 1]} : vector<2x128xf32> to vector<2x32xf32>
    %371 = vector.extract_strided_slice %368 {offsets = [0, 32], sizes = [2, 32], strides = [1, 1]} : vector<2x128xf32> to vector<2x32xf32>
    %372 = vector.extract_strided_slice %369 {offsets = [0, 64], sizes = [2, 32], strides = [1, 1]} : vector<2x128xf32> to vector<2x32xf32>
    %373 = vector.extract_strided_slice %368 {offsets = [0, 96], sizes = [2, 32], strides = [1, 1]} : vector<2x128xf32> to vector<2x32xf32>
    %374 = arith.mulf %371, %356 : vector<2x32xf32>
    %375 = arith.mulf %370, %372 : vector<2x32xf32>
    %376 = arith.addf %374, %375 : vector<2x32xf32>
    %377 = math.tanh %376 : vector<2x32xf32>
    %378 = arith.mulf %373, %377 : vector<2x32xf32>
    %c0_115 = arith.constant 0 : index
    %c0_116 = arith.constant 0 : index
    %c0_117 = arith.constant 0 : index
    %379 = vector.load %arg10[%c0_115, %c0_116, %c0_117] : memref<2x2x32xf32, #tpu.memory_space<vmem>>, vector<1x2x32xf32>
    %380 = vector.shape_cast %379 : vector<1x2x32xf32> to vector<2x32xf32>
    %381 = vector.shape_cast %338 : vector<2x32xf32> to vector<1x2x32xf32>
    tpu.vector_store %arg10[%c0_115, %c0_116, %c0_117], %381 {strides = array<i32>} : memref<2x2x32xf32, #tpu.memory_space<vmem>>, vector<1x2x32xf32>,
    %c0_118 = arith.constant 0 : index
    %c0_119 = arith.constant 0 : index
    %c0_120 = arith.constant 0 : index
    %382 = vector.load %arg11[%c0_118, %c0_119, %c0_120] : memref<2x2x32xf32, #tpu.memory_space<vmem>>, vector<1x2x32xf32>
    %383 = vector.shape_cast %382 : vector<1x2x32xf32> to vector<2x32xf32>
    %384 = vector.shape_cast %336 : vector<2x32xf32> to vector<1x2x32xf32>
    tpu.vector_store %arg11[%c0_118, %c0_119, %c0_120], %384 {strides = array<i32>} : memref<2x2x32xf32, #tpu.memory_space<vmem>>, vector<1x2x32xf32>,
    %c1_121 = arith.constant 1 : index
    %c0_122 = arith.constant 0 : index
    %c0_123 = arith.constant 0 : index
    %385 = vector.load %arg10[%c1_121, %c0_122, %c0_123] : memref<2x2x32xf32, #tpu.memory_space<vmem>>, vector<1x2x32xf32>
    %386 = vector.shape_cast %385 : vector<1x2x32xf32> to vector<2x32xf32>
    %387 = vector.shape_cast %378 : vector<2x32xf32> to vector<1x2x32xf32>
    tpu.vector_store %arg10[%c1_121, %c0_122, %c0_123], %387 {strides = array<i32>} : memref<2x2x32xf32, #tpu.memory_space<vmem>>, vector<1x2x32xf32>,
    %c1_124 = arith.constant 1 : index
    %c0_125 = arith.constant 0 : index
    %c0_126 = arith.constant 0 : index
    %388 = vector.load %arg11[%c1_124, %c0_125, %c0_126] : memref<2x2x32xf32, #tpu.memory_space<vmem>>, vector<1x2x32xf32>
    %389 = vector.shape_cast %388 : vector<1x2x32xf32> to vector<2x32xf32>
    %390 = vector.shape_cast %376 : vector<2x32xf32> to vector<1x2x32xf32>
    tpu.vector_store %arg11[%c1_124, %c0_125, %c0_126], %390 {strides = array<i32>} : memref<2x2x32xf32, #tpu.memory_space<vmem>>, vector<1x2x32xf32>,
    %391 = vector.extract_strided_slice %94 {offsets = [0, 0], sizes = [1, 32], strides = [1, 1]} : vector<2x32xf32> to vector<1x32xf32>
    %392 = vector.extract_strided_slice %138 {offsets = [0, 0], sizes = [1, 32], strides = [1, 1]} : vector<2x32xf32> to vector<1x32xf32>
    %393 = vector.extract_strided_slice %182 {offsets = [0, 0], sizes = [1, 32], strides = [1, 1]} : vector<2x32xf32> to vector<1x32xf32>
    %394 = vector.extract_strided_slice %226 {offsets = [0, 0], sizes = [1, 32], strides = [1, 1]} : vector<2x32xf32> to vector<1x32xf32>
    %395 = vector.extract_strided_slice %270 {offsets = [0, 0], sizes = [1, 32], strides = [1, 1]} : vector<2x32xf32> to vector<1x32xf32>
    %396 = vector.extract_strided_slice %314 {offsets = [0, 0], sizes = [1, 32], strides = [1, 1]} : vector<2x32xf32> to vector<1x32xf32>
    %397 = vector.extract_strided_slice %358 {offsets = [0, 0], sizes = [1, 32], strides = [1, 1]} : vector<2x32xf32> to vector<1x32xf32>
    %398 = vector.extract_strided_slice %378 {offsets = [0, 0], sizes = [1, 32], strides = [1, 1]} : vector<2x32xf32> to vector<1x32xf32>
    %399 = tpu.concatenate %391, %392, %393, %394, %395, %396, %397, %398 in 0 : vector<1x32xf32>, vector<1x32xf32>, vector<1x32xf32>, vector<1x32xf32>, vector<1x32xf32>, vector<1x32xf32>, vector<1x32xf32>, vector<1x32xf32> -> vector<8x32xf32>
    %c0_127 = arith.constant 0 : index
    %c0_128 = arith.constant 0 : index
    %400 = vector.load %arg7[%c0_127, %c0_128] : memref<32x10xf32, #tpu.memory_space<vmem>>, vector<32x10xf32>
    %cst_129 = arith.constant dense<0.000000e+00> : vector<8x10xf32>
    %401 = tpu.matmul %399, %400, %cst_129 {dimension_numbers = #tpu.dot_dimension_numbers<[1], [0], [0], [1], [0, 0, 1, 1], [], []>} : vector<8x32xf32>, vector<32x10xf32>, vector<8x10xf32> -> vector<8x10xf32>
    %c0_130 = arith.constant 0 : index
    %c0_131 = arith.constant 0 : index
    %402 = vector.load %arg8[%c0_130, %c0_131] : memref<1x10xf32, #tpu.memory_space<vmem>>, vector<1x10xf32>
    %403 = vector.broadcast %402 : vector<1x10xf32> to vector<8x10xf32>
    %404 = arith.addf %401, %403 : vector<8x10xf32>
    %c0_132 = arith.constant 0 : index
    %c0_133 = arith.constant 0 : index
    %c0_134 = arith.constant 0 : index
    %405 = vector.load %arg9[%c0_132, %c0_133, %c0_134] : memref<2x8x10xf32, #tpu.memory_space<vmem>>, vector<1x8x10xf32>
    %406 = vector.shape_cast %405 : vector<1x8x10xf32> to vector<8x10xf32>
    %407 = vector.shape_cast %404 : vector<8x10xf32> to vector<1x8x10xf32>
    tpu.vector_store %arg9[%c0_132, %c0_133, %c0_134], %407 {strides = array<i32>} : memref<2x8x10xf32, #tpu.memory_space<vmem>>, vector<1x8x10xf32>,
    %408 = vector.extract_strided_slice %94 {offsets = [1, 0], sizes = [1, 32], strides = [1, 1]} : vector<2x32xf32> to vector<1x32xf32>
    %409 = vector.extract_strided_slice %138 {offsets = [1, 0], sizes = [1, 32], strides = [1, 1]} : vector<2x32xf32> to vector<1x32xf32>
    %410 = vector.extract_strided_slice %182 {offsets = [1, 0], sizes = [1, 32], strides = [1, 1]} : vector<2x32xf32> to vector<1x32xf32>
    %411 = vector.extract_strided_slice %226 {offsets = [1, 0], sizes = [1, 32], strides = [1, 1]} : vector<2x32xf32> to vector<1x32xf32>
    %412 = vector.extract_strided_slice %270 {offsets = [1, 0], sizes = [1, 32], strides = [1, 1]} : vector<2x32xf32> to vector<1x32xf32>
    %413 = vector.extract_strided_slice %314 {offsets = [1, 0], sizes = [1, 32], strides = [1, 1]} : vector<2x32xf32> to vector<1x32xf32>
    %414 = vector.extract_strided_slice %358 {offsets = [1, 0], sizes = [1, 32], strides = [1, 1]} : vector<2x32xf32> to vector<1x32xf32>
    %415 = vector.extract_strided_slice %378 {offsets = [1, 0], sizes = [1, 32], strides = [1, 1]} : vector<2x32xf32> to vector<1x32xf32>
    %416 = tpu.concatenate %408, %409, %410, %411, %412, %413, %414, %415 in 0 : vector<1x32xf32>, vector<1x32xf32>, vector<1x32xf32>, vector<1x32xf32>, vector<1x32xf32>, vector<1x32xf32>, vector<1x32xf32>, vector<1x32xf32> -> vector<8x32xf32>
    %c0_135 = arith.constant 0 : index
    %c0_136 = arith.constant 0 : index
    %417 = vector.load %arg7[%c0_135, %c0_136] : memref<32x10xf32, #tpu.memory_space<vmem>>, vector<32x10xf32>
    %cst_137 = arith.constant dense<0.000000e+00> : vector<8x10xf32>
    %418 = tpu.matmul %416, %417, %cst_137 {dimension_numbers = #tpu.dot_dimension_numbers<[1], [0], [0], [1], [0, 0, 1, 1], [], []>} : vector<8x32xf32>, vector<32x10xf32>, vector<8x10xf32> -> vector<8x10xf32>
    %c0_138 = arith.constant 0 : index
    %c0_139 = arith.constant 0 : index
    %419 = vector.load %arg8[%c0_138, %c0_139] : memref<1x10xf32, #tpu.memory_space<vmem>>, vector<1x10xf32>
    %420 = vector.broadcast %419 : vector<1x10xf32> to vector<8x10xf32>
    %421 = arith.addf %418, %420 : vector<8x10xf32>
    %c1_140 = arith.constant 1 : index
    %c0_141 = arith.constant 0 : index
    %c0_142 = arith.constant 0 : index
    %422 = vector.load %arg9[%c1_140, %c0_141, %c0_142] : memref<2x8x10xf32, #tpu.memory_space<vmem>>, vector<1x8x10xf32>
    %423 = vector.shape_cast %422 : vector<1x8x10xf32> to vector<8x10xf32>
    %424 = vector.shape_cast %421 : vector<8x10xf32> to vector<1x8x10xf32>
    tpu.vector_store %arg9[%c1_140, %c0_141, %c0_142], %424 {strides = array<i32>} : memref<2x8x10xf32, #tpu.memory_space<vmem>>, vector<1x8x10xf32>,
    return
  }
}

</mosaic_0001>

<bundles_post_ra>
// kernel: basic_lstm_forward.1
= control target key start
LH: loop header
LB: loop body
LE: loop exit
PB: predicated region body
PF: predicated region fallthrough
CT: control target
= control target key end

     0   :  { %17 = vsyncpa [#allocation6], 0  ;;  %s4168_s0 = inlined_call_operand.vmem [shape: s32[2,8], index: 0, kind: input, shape index: {}]   ;;  %s4169_s1 = inlined_call_operand.vmem [shape: f32[16,32], index: 1, kind: input, shape index: {}]   ;;  %s4170_s2 = inlined_call_operand.hbm [shape: f32[2,32,128], index: 2, kind: input, shape index: {}]   ;;  %s4171_s3 = inlined_call_operand.hbm [shape: f32[2,32,128], index: 3, kind: input, shape index: {}]   ;;  %s4172_s4 = inlined_call_operand.vmem [shape: f32[2,1,128], index: 4, kind: input, shape index: {}]   ;;  %s4173_s5 = inlined_call_operand.vmem [shape: f32[2,2,32], index: 5, kind: input, shape index: {}]   ;;  %s4174_s6 = inlined_call_operand.vmem [shape: f32[2,2,32], index: 6, kind: input, shape index: {}]   ;;  %s4175_s7 = inlined_call_operand.vmem [shape: f32[32,10], index: 7, kind: input, shape index: {}]   ;;  %s4176_s8 = inlined_call_operand.vmem [shape: f32[1,10], index: 8, kind: input, shape index: {}]   ;;  %s4177_s9 = inlined_call_operand.hbm [shape: f32[2,8,10], index: 9, kind: output, shape index: {0}]   ;;  %s4178_s10 = inlined_call_operand.hbm [shape: f32[2,2,32], index: 10, kind: output, shape index: {1}]   ;;  %s4179_s11 = inlined_call_operand.hbm [shape: f32[2,2,32], index: 11, kind: output, shape index: {2}]  }
   0x1   :  { %18 = vsyncpa [#allocation4], 0 }
   0x2   :  { %19 = vsyncpa [#allocation9], 0 }
   0x3   :  { %20 = vsyncpa [#allocation5], 0 }
   0x4   :  { %21 = vsyncpa [#allocation12], 0  ;;  %s28_s19 = sshll.u32 %s4168_s0, 4  ;;  %s29_s19 = int_to_ptr.vmem [resolvable:$true] %s28_s19 }
   0x5   :  { %s3419_s20 = scalar_lea.vmem %s29_s19, 32  ;;  %p3424_p1 = scmp.lt.s32.totalorder %s29_s19, %s29_s19 }
   0x6   :  { %p3420_p0 = scmp.ne.s32.totalorder %s29_s19, %s3419_s20  ;;  %p3425_p2 = scmp.lt.s32.totalorder %s3419_s20, %s3419_s20 }
   0x8   :  { %p3426_p3 = por %p3425_p2, %p3424_p1 }
   0xa   :  { %p3427_p4 = pnand %p3426_p3, %p3420_p0 }
   0xc   :  { %3430 = shalt.err (!%p3427_p4)
}
   0xd   :  { %s3541_s21 = smov [#allocation3]   ;;  %s3542_s22 = smov [#allocation7]  }
   0xe   :  { %31 = dma.vmem_to_smem %s29_s19, 32, %s3541_s21, [#allocation6]  }
   0xf   :  { %s39_s23 = sshll.u32 %s3542_s22, 4  ;;  %s40_s23 = int_to_ptr.vmem [resolvable:$true] %s39_s23 }
  0x10   :  { %s3439_s24 = scalar_lea.vmem %s40_s23, 1024  ;;  %p3444_p6 = scmp.lt.s32.totalorder %s40_s23, %s40_s23 }
  0x11   :  { %p3440_p5 = scmp.ne.s32.totalorder %s40_s23, %s3439_s24  ;;  %p3445_p7 = scmp.lt.s32.totalorder %s3439_s24, %s3439_s24 }
  0x13   :  { %p3446_p8 = por %p3445_p7, %p3444_p6 }
  0x15   :  { %p3447_p9 = pnand %p3446_p8, %p3440_p5 }
  0x17   :  { %3450 = shalt.err (!%p3447_p9)
}
  0x18   :  { %s3543_s0 = smov 128   ;;  %s3544_s25 = smov 8  }
  0x19   :  { %45 = dma.hbm_to_vmem [thread:$0]  %s4170_s2, 1024, %s40_s23, [#allocation4], %s3543_s0, %s3543_s0, %s3544_s25  }
  0x1a   :  { %s3545_s28 = smov [#allocation8]  }
  0x1b   :  { %s51_s29 = sshll.u32 %s3545_s28, 4  ;;  %s52_s29 = int_to_ptr.vmem [resolvable:$true] %s51_s29 }
  0x1c   :  { %s3459_s30 = scalar_lea.vmem %s52_s29, 1024  ;;  %p3464_p11 = scmp.lt.s32.totalorder %s52_s29, %s52_s29 }
  0x1d   :  { %p3460_p10 = scmp.ne.s32.totalorder %s52_s29, %s3459_s30  ;;  %p3465_p12 = scmp.lt.s32.totalorder %s3459_s30, %s3459_s30 }
  0x1f   :  { %p3466_p13 = por %p3465_p12, %p3464_p11 }
  0x21   :  { %p3467_p0 = pnand %p3466_p13, %p3460_p10 }
  0x23   :  { %3470 = shalt.err (!%p3467_p0)
}
  0x24   :  { %57 = dma.hbm_to_vmem [thread:$0]  %s4171_s3, 1024, %s52_s29, [#allocation9], %s3543_s0, %s3543_s0, %s3544_s25  }
  0x25   :  { %3531 = dma.done.wait [#allocation6], 32  }
  0x26   :  { %3532 = vsyncadd [#allocation6], 4294967264 }
  0x27   :  { %3533 = dma.done.wait [#allocation4], 1024  }
  0x28   :  { %3534 = vsyncadd [#allocation4], 4294966272 }
  0x29   :  { %3535 = dma.done.wait [#allocation9], 1024  }
  0x2a   :  { %3536 = vsyncadd [#allocation9], 4294966272 }
  0x2b   :  { %77 = sfence }
  0x2c   :  { %v85_v0 = vld [vmem:[#allocation7 + $0x18] sm:$0xff]  ;;  %v84_v1 = vld [vmem:[#allocation7 + $0x10] sm:$0xff]  ;;  %vm93_vm0 = vcmask 261120   ;;  %v3546_v3 = vmov 0.0   ;;  %v83_v4 = vld [vmem:[#allocation7 + $0x8] sm:$0xff]  ;;  %vm3547_vm1 = vmmov 0  }
  0x2d   :  { %2967 = vmatprep.subr.mxu0 %v85_v0  ;;  %v78_v2 = vld [vmem:[%s4169_s1] sm:$0xff]  ;;  %2978 = vmatprep.subr.mxu1 %v3546_v3  ;;  %v79_v6 = vld [vmem:[%s4169_s1 + $0x8] sm:$0xff]  ;;  %v82_v9 = vld [vmem:[#allocation7] sm:$0xff]  ;;  %s2771_s19 = sld [smem:[#allocation3 + $0x80]]  ;;  %vm208_vm2 = vcmask 1040384   ;;  %s3548_s23 = smov 64  }
  0x2e   :  { %2968 = vmatpush3.msra.mxu0 %v85_v0  ;;  %v80_v5 = vmul.f32 5.656854, %v78_v2  ;;  %v3637_v7 = vld [vmem:[#allocation8 + $0x18] sm:$0xff]  ;;  %2986 = vmatprep.mubr.msk.f32.mxu1 %vm3547_vm1, %v3546_v3  ;;  %v3642_v8 = vld [vmem:[#allocation8 + $0x10] sm:$0xff]  ;;  %v81_v10 = vmul.f32 5.656854, %v79_v6 }
  0x2f   :  { %2969 = vmatprep.subr.mxu0 %v84_v1  ;;  %2979 = vmatpush3.msra.mxu1 %v3637_v7  ;;  %v3646_v11 = vld [vmem:[#allocation8 + $0x8] sm:$0xff]  ;;  %v3650_v12 = vld [vmem:[#allocation8] sm:$0xff]  ;;  %v193_v13 = vld [vmem:[%s4173_s5] sm:$0x3]  ;;  %s199_s20 = sld [smem:[#allocation3]]  ;;  %s3549_s27 = smov 32  }
  0x30   :  { %2970 = vmatpush3.msra.mxu0 %v84_v1  ;;  %2975 = vmatprep.mubr.msk.f32.mxu0 %vm93_vm0, %v80_v5  ;;  %v2765_v14 = vld [vmem:[%s4172_s4] ss:$0 sm:$0xff]  ;;  %v3687_v38 = vld [vmem:[#allocation7 + $0x38] sm:$0xff]  ;;  %v3693_v40 = vld [vmem:[#allocation7 + $0x28] sm:$0xff]  ;;  %s2774_s30 = sld [smem:[#allocation3 + $0x1]]  ;;  %vm2490_vm3 = vcmask 1041408  }
  0x31   :  { %2971 = vmatprep.subr.mxu0 %v83_v4  ;;  %2980 = vmatprep.subr.mxu1 %v3546_v3  ;;  %v196_v27 = vld [vmem:[%s4174_s6] sm:$0x3]  ;;  %v3697_v41 = vld [vmem:[#allocation7 + $0x20] sm:$0xff]  ;;  %v3705_v45 = vld [vmem:[#allocation8 + $0x38] sm:$0xff]  ;;  %s2782_s1 = sld [smem:[#allocation3 + $0x2]]  ;;  %vm2492_vm4 = vcmask 1042432  }
  0x32   :  { %2972 = vmatpush3.msra.mxu0 %v83_v4  ;;  %2981 = vmatpush3.msra.mxu1 %v3642_v8  ;;  %v3689_v39 = vld [vmem:[#allocation7 + $0x30] sm:$0xff]  ;;  %v3715_v48 = vld [vmem:[#allocation8 + $0x28] sm:$0xff]  ;;  %v3721_v49 = vld [vmem:[#allocation8 + $0x20] sm:$0xff]  ;;  %s2790_s18 = sld [smem:[#allocation3 + $0x83]]  ;;  %vm2494_vm5 = vcmask 1043456   ;;  %vm2496_vm6 = vcmask 1044480  }
  0x33   :  { %2973 = vmatprep.subr.mxu0 %v82_v9  ;;  %2982 = vmatprep.subr.mxu1 %v3546_v3  ;;  %s203_s21 = scalar_lea.vmem [#allocation2], %s2771_s19  ;;  %v3709_v47 = vld [vmem:[#allocation8 + $0x30] sm:$0xff]  ;;  %s2789_s19 = sld [smem:[#allocation3 + $0x3]]  ;;  %vm2498_vm7 = vcmask 1045504   ;;  %vm2456_vm8 = vcmask 254976   ;;  %vm2500_vm9 = vcmask 1046528  }
  0x34   :  { %2974 = vmatpush3.msra.mxu0 %v82_v9  ;;  %2983 = vmatpush3.msra.mxu1 %v3646_v11  ;;  %v2769_v50 = vld [vmem:[%s4173_s5 + $0x2] sm:$0x3]  ;;  %s2775_s5 = sld [smem:[#allocation3 + $0x81]]  ;;  %v3753_v60 = vld [vmem:[%s4172_s4 + $0x1] ss:$0 sm:$0xff] }
  0x35   :  { %2976 = vmatmul.mubr.msk.f32.vlgmr.msra.gmra.mxu0 %vm93_vm0, %v81_v10  ;;  %2984 = vmatprep.subr.mxu1 %v3546_v3  ;;  %s200_s22 = scalar_lea.vmem [#allocation2], %s199_s20  ;;  %v2770_v4 = vld [vmem:[%s4174_s6 + $0x2] sm:$0x3]  ;;  %s2783_s6 = sld [smem:[#allocation3 + $0x82]] }
  0x36   :  { %2985 = vmatpush3.msra.mxu1 %v3650_v12  ;;  %2989 = vmatprep.subr.mxu0 %v3546_v3  ;;  %s313_s13 = scalar_lea.vmem [#allocation2], %s2774_s30  ;;  %s2796_s24 = sld [smem:[#allocation3 + $0x4]] }
  0x37   :  { %2987 = vmatmul.mubr.msk.f32.vlgmr.msra.gmra.mxu1 %vm93_vm0, %v193_v13  ;;  %2990 = vmatpush3.msra.mxu0 %v3637_v7  ;;  %s601_s17 = scalar_lea.vmem [#allocation2], %s2782_s1  ;;  %s2804_s29 = sld [smem:[#allocation3 + $0x85]] }
  0x38   :  { %3000 = vmatprep.subr.mxu1 %v3546_v3  ;;  %2991 = vmatprep.subr.mxu0 %v3546_v3  ;;  %s884_s20 = scalar_lea.vmem [#allocation2], %s2790_s18  ;;  %s2810_s2 = sld [smem:[#allocation3 + $0x6]] }
  0x39   :  { %2992 = vmatpush3.msra.mxu0 %v3642_v8  ;;  %2997 = vmatprep.mubr.msk.f32.mxu0 %vm3547_vm1, %v3546_v3  ;;  %s2818_s15 = sld [smem:[#allocation3 + $0x87]] }
  0x3a   :  { %2993 = vmatprep.subr.mxu0 %v3546_v3  ;;  %3008 = vmatprep.mubr.msk.f32.mxu1 %vm3547_vm1, %v3546_v3  ;;  %s316_s12 = scalar_lea.vmem [#allocation2], %s2775_s5  ;;  %s2803_s5 = sld [smem:[#allocation3 + $0x5]] }
  0x3b   :  { %2994 = vmatpush3.msra.mxu0 %v3646_v11  ;;  %3001 = vmatpush3.msra.mxu1 %v3687_v38  ;;  %s604_s16 = scalar_lea.vmem [#allocation2], %s2783_s6  ;;  %s2817_s6 = sld [smem:[#allocation3 + $0x7]] }
  0x3c   :  { %2995 = vmatprep.subr.mxu0 %v3546_v3  ;;  %3002 = vmatprep.subr.mxu1 %v3546_v3  ;;  %s1161_s28 = scalar_lea.vmem [#allocation2], %s2796_s24 }
  0x3d   :  { %2996 = vmatpush3.msra.mxu0 %v3650_v12  ;;  %3003 = vmatpush3.msra.mxu1 %v3689_v39  ;;  %s1444_s30 = scalar_lea.vmem [#allocation2], %s2804_s29 }
  0x3e   :  { %3011 = vmatprep.subr.mxu0 %v3546_v3  ;;  %3004 = vmatprep.subr.mxu1 %v3546_v3  ;;  %s1721_s3 = scalar_lea.vmem [#allocation2], %s2810_s2 }
  0x3f   :  { %3005 = vmatpush3.msra.mxu1 %v3693_v40  ;;  %s2004_s1 = scalar_lea.vmem [#allocation2], %s2818_s15 }
  0x40   :  { %3006 = vmatprep.subr.mxu1 %v3546_v3 }
  0x41   :  { %3007 = vmatpush3.msra.mxu1 %v3697_v41 }
  0x42   :  { %3022 = vmatprep.subr.mxu1 %v3546_v3 }
  0xf5   :  { %v2977_v15 = vpop.f32.mrf.mxu0 }
  0xf6   :  { %v172_v16 = vadd.f32 %v2977_v15, %v2765_v14 }
  0xf7   :  { %v166_v17 = vpop.f32.mrf.mxu0  ;;  %v279_v18 = vpop.f32.mrf.mxu1 }
  0xf8   :  { %176 = vst [vmem:[#allocation2 + $0x8] sm:$0xff] %v172_v16  ;;  %v167_v19 = vadd.f32 %v2765_v14, %v166_v17 }
  0xf9   :  { %v2988_v20 = vpop.f32.mrf.mxu1 }
  0xfa   :  { %175 = vst [vmem:[#allocation2] sm:$0xff] %v167_v19 }
 0x101   :  { %v204_v21 = vld [vmem:[%s203_s21] sm:$0x1]  ;;  %s881_s21 = scalar_lea.vmem [#allocation2], %s2789_s19 }
 0x102   :  { %v206_v22 = vrot.slane %v204_v21, 7  ;;  %v201_v23 = vld [vmem:[%s200_s22] sm:$0x1]  ;;  %s2797_s22 = sld [smem:[#allocation3 + $0x84]] }
 0x103   :  { %v317_v51 = vld [vmem:[%s316_s12] sm:$0x1]  ;;  %s1441_s12 = scalar_lea.vmem [#allocation2], %s2803_s5 }
 0x104   :  { %v209_v24 = vsel %vm208_vm2, %v201_v23, %v206_v22  ;;  %v319_v52 = vrot.slane %v317_v51, 7  ;;  %v314_v53 = vld [vmem:[%s313_s13] sm:$0x1]  ;;  %s2811_s13 = sld [smem:[#allocation3 + $0x86]] }
 0x105   :  { %v283_v25 = vadd.f32 %v279_v18, %v209_v24 }
 0x106   :  { %v321_v54 = vsel %vm208_vm2, %v314_v53, %v319_v52 }
 0x107   :  { %3278 = vtanh.f32 %v283_v25  ;;  %v2773_v28 = vmul.f32 -1.442695, %v283_v25 }
 0x108   :  { %s1164_s26 = scalar_lea.vmem [#allocation2], %s2797_s22 }
 0x109   :  { %3280 = vpow2.f32 %v2773_v28 }
 0x10a   :  { %s1724_s14 = scalar_lea.vmem [#allocation2], %s2811_s13 }
 0x114   :  { %v3279_v26 = vpop.eup %3278 }
 0x115   :  { %297 = vrot.lane.b32.xlu0 %v3279_v26, %s3548_s23 }
 0x116   :  { %v3281_v29 = vpop.eup %3280 }
 0x117   :  { %v287_v30 = vadd.f32 1.0, %v3281_v29 }
 0x119   :  { %292 = vrot.lane.b32.xlu0 %v196_v27, %s3549_s27  ;;  %3282 = vrcp.f32 %v287_v30 }
 0x126   :  { %v3283_v31 = vpop.eup %3282 }
 0x187   :  { %v298_v32 = vpop.permute.xlu0 %297 }
 0x188   :  { %v300_v33 = vmul.f32 %v3283_v31, %v298_v32 }
 0x18a   :  { %302 = vrot.lane.b32.xlu1 %v300_v33, %s3549_s27 }
 0x18b   :  { %v293_v34 = vpop.permute.xlu0 %292 }
 0x18c   :  { %v295_v35 = vmul.f32 %v3283_v31, %v293_v34 }
 0x1fc   :  { %v303_v36 = vpop.permute.xlu1 %302 }
 0x1fd   :  { %v3684_v37 = vadd.f32 %v303_v36, %v295_v35  ;;  %v605_v36 = vld [vmem:[%s604_s16] sm:$0x1]  ;;  %s2001_s16 = scalar_lea.vmem [#allocation2], %s2817_s6 }
 0x1ff   :  { %3284 = vtanh.f32 %v3684_v37 }
 0x20c   :  { %v3285_v42 = vpop.eup %3284 }
 0x20d   :  { %308 = vrot.lane.b32.xlu1 %v3285_v42, %s3548_s23  ;;  %v602_v42 = vld [vmem:[%s601_s17] sm:$0x1] }
 0x27f   :  { %v309_v43 = vpop.permute.xlu1 %308 }
 0x280   :  { %v311_v44 = vmul.f32 %v3283_v31, %v309_v43 }
 0x282   :  { %323 = vrot.lane.b32.xlu0 %v311_v44, %s3549_s27 }
 0x2f4   :  { %v324_v46 = vpop.permute.xlu0 %323 }
 0x2f5   :  { %2998 = vmatmul.mubr.msk.f32.vlgmr.msra.gmra.mxu0 %vm93_vm0, %v324_v46  ;;  %3009 = vmatmul.mubr.msk.f32.vlgmr.msra.gmra.mxu1 %vm93_vm0, %v324_v46 }
 0x2f6   :  { %3012 = vmatpush3.msra.mxu0 %v3705_v45  ;;  %3019 = vmatprep.mubr.msk.f32.mxu0 %vm3547_vm1, %v3546_v3 }
 0x2f7   :  { %3013 = vmatprep.subr.mxu0 %v3546_v3  ;;  %3023 = vmatpush3.msra.mxu1 %v3637_v7 }
 0x2f8   :  { %3014 = vmatpush3.msra.mxu0 %v3709_v47  ;;  %3024 = vmatprep.subr.mxu1 %v3546_v3 }
 0x2f9   :  { %3015 = vmatprep.subr.mxu0 %v3546_v3  ;;  %3025 = vmatpush3.msra.mxu1 %v3642_v8 }
 0x2fa   :  { %3016 = vmatpush3.msra.mxu0 %v3715_v48  ;;  %3026 = vmatprep.subr.mxu1 %v3546_v3 }
 0x2fb   :  { %3017 = vmatprep.subr.mxu0 %v3546_v3  ;;  %3027 = vmatpush3.msra.mxu1 %v3646_v11 }
 0x2fc   :  { %3018 = vmatpush3.msra.mxu0 %v3721_v49  ;;  %3028 = vmatprep.subr.mxu1 %v3546_v3 }
 0x2fd   :  { %3020 = vmatmul.mubr.msk.f32.vlgmr.msra.gmra.mxu0 %vm93_vm0, %v2769_v50  ;;  %3033 = vmatprep.subr.mxu0 %v3546_v3 }
 0x2fe   :  { %3034 = vmatpush3.msra.mxu0 %v3687_v38  ;;  %3029 = vmatpush3.msra.mxu1 %v3650_v12 }
 0x2ff   :  { %3035 = vmatprep.subr.mxu0 %v3546_v3  ;;  %3030 = vmatprep.mubr.msk.f32.mxu1 %vm3547_vm1, %v3546_v3 }
 0x300   :  { %3036 = vmatpush3.msra.mxu0 %v3689_v39  ;;  %3041 = vmatprep.mubr.msk.f32.mxu0 %vm3547_vm1, %v3546_v3 }
 0x301   :  { %3037 = vmatprep.subr.mxu0 %v3546_v3  ;;  %3044 = vmatprep.subr.mxu1 %v3546_v3 }
 0x302   :  { %3038 = vmatpush3.msra.mxu0 %v3693_v40 }
 0x303   :  { %3039 = vmatprep.subr.mxu0 %v3546_v3 }
 0x304   :  { %3040 = vmatpush3.msra.mxu0 %v3697_v41 }
 0x305   :  { %3055 = vmatprep.subr.mxu0 %v3546_v3 }
 0x3b5   :  { %v393_v55 = vpop.f32.mrf.mxu0  ;;  %v494_v56 = vpop.f32.mrf.mxu1 }
 0x3b6   :  { %v397_v57 = vadd.f32 %v393_v55, %v321_v54  ;;  %v495_v61 = vadd.f32 %v3753_v60, %v494_v56 }
 0x3b7   :  { %v2999_v58 = vpop.f32.mrf.mxu0  ;;  %v3010_v59 = vpop.f32.mrf.mxu1 }
 0x3b8   :  { %3286 = vtanh.f32 %v397_v57  ;;  %v2777_v5 = vmul.f32 -1.442695, %v397_v57 }
 0x3bd   :  { %v567_v62 = vpop.f32.mrf.mxu0 }
 0x3be   :  { %v571_v63 = vadd.f32 %v567_v62, %v495_v61 }
 0x3bf   :  { %v3021_v0 = vpop.f32.mrf.mxu0 }
 0x3c0   :  { %3288 = vtanh.f32 %v571_v63  ;;  %v2781_v6 = vmul.f32 -1.442695, %v571_v63 }
 0x3c1   :  { %3290 = vpow2.f32 %v2777_v5 }
 0x3c2   :  { %3292 = vpow2.f32 %v2781_v6 }
 0x3c5   :  { %v3287_v1 = vpop.eup %3286 }
 0x3c6   :  { %407 = vrot.lane.b32.xlu1 %v3287_v1, %s3548_s23 }
 0x3cd   :  { %v3289_v2 = vpop.eup %3288 }
 0x3ce   :  { %585 = vrot.lane.b32.xlu0 %v3289_v2, %s3548_s23  ;;  %v3291_v9 = vpop.eup %3290 }
 0x3cf   :  { %v401_v10 = vadd.f32 1.0, %v3291_v9  ;;  %v3293_v13 = vpop.eup %3292 }
 0x3d0   :  { %v575_v14 = vadd.f32 1.0, %v3293_v13 }
 0x3d1   :  { %3294 = vrcp.f32 %v401_v10 }
 0x3d2   :  { %580 = vrot.lane.b32.xlu0 %v2770_v4, %s3549_s27  ;;  %3296 = vrcp.f32 %v575_v14 }
 0x3de   :  { %v3295_v15 = vpop.eup %3294 }
 0x3df   :  { %v3297_v18 = vpop.eup %3296  ;;  %v405_v21 = vmul.f32 %v3295_v15, %v3684_v37  ;;  %v607_v37 = vrot.slane %v605_v36, 7 }
 0x3e1   :  { %v609_v43 = vsel %vm208_vm2, %v602_v42, %v607_v37 }
 0x438   :  { %v408_v16 = vpop.permute.xlu1 %407 }
 0x439   :  { %v410_v17 = vmul.f32 %v3295_v15, %v408_v16 }
 0x43b   :  { %412 = vrot.lane.b32.xlu1 %v410_v17, %s3549_s27 }
 0x440   :  { %v586_v19 = vpop.permute.xlu0 %585 }
 0x441   :  { %v588_v20 = vmul.f32 %v3297_v18, %v586_v19 }
 0x443   :  { %590 = vrot.lane.b32.xlu1 %v588_v20, %s3549_s27 }
 0x444   :  { %v581_v24 = vpop.permute.xlu0 %580 }
 0x445   :  { %v583_v25 = vmul.f32 %v3297_v18, %v581_v24 }
 0x4ad   :  { %v413_v22 = vpop.permute.xlu1 %412 }
 0x4ae   :  { %v3765_v23 = vadd.f32 %v413_v22, %v405_v21 }
 0x4b0   :  { %3298 = vtanh.f32 %v3765_v23 }
 0x4b5   :  { %v591_v26 = vpop.permute.xlu1 %590 }
 0x4b6   :  { %v3768_v27 = vadd.f32 %v591_v26, %v583_v25 }
 0x4b8   :  { %3300 = vtanh.f32 %v3768_v27 }
 0x4bd   :  { %v3299_v28 = vpop.eup %3298 }
 0x4be   :  { %418 = vrot.lane.b32.xlu0 %v3299_v28, %s3548_s23 }
 0x4c5   :  { %v3301_v29 = vpop.eup %3300 }
 0x4c6   :  { %596 = vrot.lane.b32.xlu1 %v3301_v29, %s3548_s23  ;;  %v882_v29 = vld [vmem:[%s881_s21] sm:$0x1] }
 0x530   :  { %v419_v30 = vpop.permute.xlu0 %418 }
 0x531   :  { %v421_v31 = vmul.f32 %v3295_v15, %v419_v30 }
 0x533   :  { %611 = vrot.lane.b32.xlu0 %v421_v31, %s3549_s27 }
 0x538   :  { %v597_v32 = vpop.permute.xlu1 %596 }
 0x539   :  { %v3774_v33 = vmul.f32 %v3297_v18, %v597_v32 }
 0x53b   :  { %781 = vrot.lane.b32.xlu1 %v3774_v33, %s3549_s27 }
 0x5a5   :  { %v612_v34 = vpop.permute.xlu0 %611 }
 0x5a6   :  { %3031 = vmatmul.mubr.msk.f32.vlgmr.msra.gmra.mxu1 %vm93_vm0, %v612_v34  ;;  %3042 = vmatmul.mubr.msk.f32.vlgmr.msra.gmra.mxu0 %vm93_vm0, %v612_v34 }
 0x5a7   :  { %3045 = vmatpush3.msra.mxu1 %v3705_v45  ;;  %3052 = vmatprep.mubr.msk.f32.mxu1 %vm3547_vm1, %v3546_v3 }
 0x5a8   :  { %3046 = vmatprep.subr.mxu1 %v3546_v3  ;;  %3056 = vmatpush3.msra.mxu0 %v3637_v7 }
 0x5a9   :  { %3047 = vmatpush3.msra.mxu1 %v3709_v47  ;;  %3057 = vmatprep.subr.mxu0 %v3546_v3 }
 0x5aa   :  { %3048 = vmatprep.subr.mxu1 %v3546_v3  ;;  %3058 = vmatpush3.msra.mxu0 %v3642_v8 }
 0x5ab   :  { %3049 = vmatpush3.msra.mxu1 %v3715_v48  ;;  %3059 = vmatprep.subr.mxu0 %v3546_v3 }
 0x5ac   :  { %3050 = vmatprep.subr.mxu1 %v3546_v3  ;;  %3060 = vmatpush3.msra.mxu0 %v3646_v11 }
 0x5ad   :  { %3051 = vmatpush3.msra.mxu1 %v3721_v49  ;;  %v782_v35 = vpop.permute.xlu1 %781  ;;  %3061 = vmatprep.subr.mxu0 %v3546_v3 }
 0x5ae   :  { %3053 = vmatmul.mubr.msk.f32.vlgmr.msra.gmra.mxu1 %vm93_vm0, %v782_v35  ;;  %3066 = vmatprep.subr.mxu1 %v3546_v3 }
 0x5af   :  { %3067 = vmatpush3.msra.mxu1 %v3687_v38  ;;  %3062 = vmatpush3.msra.mxu0 %v3650_v12 }
 0x5b0   :  { %3068 = vmatprep.subr.mxu1 %v3546_v3  ;;  %3063 = vmatprep.mubr.msk.f32.mxu0 %vm3547_vm1, %v3546_v3 }
 0x5b1   :  { %3069 = vmatpush3.msra.mxu1 %v3689_v39  ;;  %3077 = vmatprep.subr.mxu0 %v3546_v3 }
 0x5b2   :  { %3070 = vmatprep.subr.mxu1 %v3546_v3  ;;  %3074 = vmatprep.mubr.msk.f32.mxu1 %vm3547_vm1, %v3546_v3 }
 0x5b3   :  { %3071 = vmatpush3.msra.mxu1 %v3693_v40 }
 0x5b4   :  { %3072 = vmatprep.subr.mxu1 %v3546_v3 }
 0x5b5   :  { %3073 = vmatpush3.msra.mxu1 %v3697_v41 }
 0x5b6   :  { %3088 = vmatprep.subr.mxu1 %v3546_v3 }
 0x666   :  { %v681_v44 = vpop.f32.mrf.mxu1  ;;  %v776_v46 = vpop.f32.mrf.mxu0 }
 0x667   :  { %v685_v50 = vadd.f32 %v681_v44, %v609_v43  ;;  %v777_v53 = vadd.f32 %v3753_v60, %v776_v46 }
 0x668   :  { %v3032_v51 = vpop.f32.mrf.mxu1  ;;  %v3043_v52 = vpop.f32.mrf.mxu0 }
 0x669   :  { %3302 = vtanh.f32 %v685_v50  ;;  %v2785_v59 = vmul.f32 -1.442695, %v685_v50 }
 0x66e   :  { %v851_v54 = vpop.f32.mrf.mxu1 }
 0x66f   :  { %v855_v55 = vadd.f32 %v851_v54, %v777_v53 }
 0x670   :  { %v3054_v56 = vpop.f32.mrf.mxu1 }
 0x671   :  { %3304 = vtanh.f32 %v855_v55  ;;  %v2788_v61 = vmul.f32 -1.442695, %v855_v55 }
 0x672   :  { %3306 = vpow2.f32 %v2785_v59 }
 0x673   :  { %3308 = vpow2.f32 %v2788_v61 }
 0x676   :  { %v3303_v57 = vpop.eup %3302 }
 0x677   :  { %695 = vrot.lane.b32.xlu0 %v3303_v57, %s3548_s23 }
 0x67e   :  { %v3305_v58 = vpop.eup %3304 }
 0x67f   :  { %865 = vrot.lane.b32.xlu1 %v3305_v58, %s3548_s23  ;;  %v3307_v62 = vpop.eup %3306 }
 0x680   :  { %v689_v63 = vadd.f32 1.0, %v3307_v62  ;;  %v3309_v0 = vpop.eup %3308 }
 0x681   :  { %v859_v1 = vadd.f32 1.0, %v3309_v0 }
 0x682   :  { %3310 = vrcp.f32 %v689_v63 }
 0x683   :  { %3312 = vrcp.f32 %v859_v1 }
 0x68f   :  { %v3311_v2 = vpop.eup %3310 }
 0x690   :  { %v3313_v6 = vpop.eup %3312  ;;  %v693_v13 = vmul.f32 %v3311_v2, %v3765_v23 }
 0x691   :  { %v863_v16 = vmul.f32 %v3313_v6, %v3768_v27  ;;  %v885_v27 = vld [vmem:[%s884_s20] sm:$0x1] }
 0x692   :  { %v887_v28 = vrot.slane %v885_v27, 7 }
 0x694   :  { %v889_v30 = vsel %vm208_vm2, %v882_v29, %v887_v28  ;;  %v1162_v28 = vld [vmem:[%s1161_s28] sm:$0x1]  ;;  %s3551_s28 = smov [#allocation11]  }
 0x695   :  { %s2716_s29 = sshll.u32 %s3551_s28, 4  ;;  %s2717_s29 = int_to_ptr.vmem [resolvable:$true] %s2716_s29 }
 0x696   :  { %s3471_s5 = scalar_lea.vmem %s2717_s29, 64  ;;  %p3476_p2 = scmp.lt.s32.totalorder %s2717_s29, %s2717_s29 }
 0x697   :  { %p3472_p1 = scmp.ne.s32.totalorder %s2717_s29, %s3471_s5  ;;  %p3477_p3 = scmp.lt.s32.totalorder %s3471_s5, %s3471_s5 }
 0x699   :  { %p3478_p4 = por %p3477_p3, %p3476_p2 }
 0x69b   :  { %p3479_p5 = pnand %p3478_p4, %p3472_p1 }
 0x6e9   :  { %v696_v4 = vpop.permute.xlu0 %695 }
 0x6ea   :  { %v698_v5 = vmul.f32 %v3311_v2, %v696_v4 }
 0x6ec   :  { %700 = vrot.lane.b32.xlu0 %v698_v5, %s3549_s27 }
 0x6f1   :  { %v866_v9 = vpop.permute.xlu1 %865 }
 0x6f2   :  { %v868_v10 = vmul.f32 %v3313_v6, %v866_v9 }
 0x6f4   :  { %870 = vrot.lane.b32.xlu1 %v868_v10, %s3549_s27 }
 0x75e   :  { %v701_v14 = vpop.permute.xlu0 %700 }
 0x75f   :  { %v3818_v15 = vadd.f32 %v701_v14, %v693_v13 }
 0x761   :  { %3314 = vtanh.f32 %v3818_v15 }
 0x766   :  { %v871_v17 = vpop.permute.xlu1 %870 }
 0x767   :  { %v3822_v18 = vadd.f32 %v871_v17, %v863_v16 }
 0x769   :  { %3316 = vtanh.f32 %v3822_v18 }
 0x76e   :  { %v3315_v19 = vpop.eup %3314 }
 0x76f   :  { %706 = vrot.lane.b32.xlu0 %v3315_v19, %s3548_s23 }
 0x776   :  { %v3317_v20 = vpop.eup %3316 }
 0x777   :  { %876 = vrot.lane.b32.xlu1 %v3317_v20, %s3548_s23 }
 0x7e1   :  { %v707_v21 = vpop.permute.xlu0 %706 }
 0x7e2   :  { %v709_v22 = vmul.f32 %v3311_v2, %v707_v21 }
 0x7e4   :  { %891 = vrot.lane.b32.xlu0 %v709_v22, %s3549_s27 }
 0x7e9   :  { %v877_v23 = vpop.permute.xlu1 %876 }
 0x7ea   :  { %v3828_v24 = vmul.f32 %v3313_v6, %v877_v23 }
 0x7ec   :  { %1061 = vrot.lane.b32.xlu1 %v3828_v24, %s3549_s27 }
 0x856   :  { %v892_v25 = vpop.permute.xlu0 %891 }
 0x857   :  { %3064 = vmatmul.mubr.msk.f32.vlgmr.msra.gmra.mxu0 %vm93_vm0, %v892_v25  ;;  %3075 = vmatmul.mubr.msk.f32.vlgmr.msra.gmra.mxu1 %vm93_vm0, %v892_v25 }
 0x858   :  { %3078 = vmatpush3.msra.mxu0 %v3705_v45  ;;  %3085 = vmatprep.mubr.msk.f32.mxu0 %vm3547_vm1, %v3546_v3 }
 0x859   :  { %3079 = vmatprep.subr.mxu0 %v3546_v3  ;;  %3089 = vmatpush3.msra.mxu1 %v3637_v7 }
 0x85a   :  { %3080 = vmatpush3.msra.mxu0 %v3709_v47  ;;  %3090 = vmatprep.subr.mxu1 %v3546_v3 }
 0x85b   :  { %3081 = vmatprep.subr.mxu0 %v3546_v3  ;;  %3091 = vmatpush3.msra.mxu1 %v3642_v8 }
 0x85c   :  { %3082 = vmatpush3.msra.mxu0 %v3715_v48  ;;  %3092 = vmatprep.subr.mxu1 %v3546_v3 }
 0x85d   :  { %3083 = vmatprep.subr.mxu0 %v3546_v3  ;;  %3093 = vmatpush3.msra.mxu1 %v3646_v11 }
 0x85e   :  { %3084 = vmatpush3.msra.mxu0 %v3721_v49  ;;  %v1062_v26 = vpop.permute.xlu1 %1061  ;;  %3094 = vmatprep.subr.mxu1 %v3546_v3 }
 0x85f   :  { %3086 = vmatmul.mubr.msk.f32.vlgmr.msra.gmra.mxu0 %vm93_vm0, %v1062_v26  ;;  %3099 = vmatprep.subr.mxu0 %v3546_v3 }
 0x860   :  { %3100 = vmatpush3.msra.mxu0 %v3687_v38  ;;  %3095 = vmatpush3.msra.mxu1 %v3650_v12 }
 0x861   :  { %3101 = vmatprep.subr.mxu0 %v3546_v3  ;;  %3096 = vmatprep.mubr.msk.f32.mxu1 %vm3547_vm1, %v3546_v3 }
 0x862   :  { %3102 = vmatpush3.msra.mxu0 %v3689_v39  ;;  %3107 = vmatprep.mubr.msk.f32.mxu0 %vm3547_vm1, %v3546_v3 }
 0x863   :  { %3103 = vmatprep.subr.mxu0 %v3546_v3  ;;  %3110 = vmatprep.subr.mxu1 %v3546_v3 }
 0x864   :  { %3104 = vmatpush3.msra.mxu0 %v3693_v40 }
 0x865   :  { %3105 = vmatprep.subr.mxu0 %v3546_v3 }
 0x866   :  { %3106 = vmatpush3.msra.mxu0 %v3697_v41 }
 0x867   :  { %3121 = vmatprep.subr.mxu0 %v3546_v3 }
 0x917   :  { %v961_v31 = vpop.f32.mrf.mxu0  ;;  %v1056_v32 = vpop.f32.mrf.mxu1 }
 0x918   :  { %v965_v34 = vadd.f32 %v961_v31, %v889_v30  ;;  %v1057_v37 = vadd.f32 %v3753_v60, %v1056_v32 }
 0x919   :  { %v3065_v35 = vpop.f32.mrf.mxu0  ;;  %v3076_v36 = vpop.f32.mrf.mxu1 }
 0x91a   :  { %3318 = vtanh.f32 %v965_v34  ;;  %v2792_v51 = vmul.f32 -1.442695, %v965_v34 }
 0x91f   :  { %v1131_v42 = vpop.f32.mrf.mxu0 }
 0x920   :  { %v1135_v43 = vadd.f32 %v1131_v42, %v1057_v37 }
 0x921   :  { %v3087_v44 = vpop.f32.mrf.mxu0 }
 0x922   :  { %3320 = vtanh.f32 %v1135_v43  ;;  %v2795_v52 = vmul.f32 -1.442695, %v1135_v43 }
 0x923   :  { %3322 = vpow2.f32 %v2792_v51 }
 0x924   :  { %3324 = vpow2.f32 %v2795_v52 }
 0x927   :  { %v3319_v46 = vpop.eup %3318 }
 0x928   :  { %975 = vrot.lane.b32.xlu0 %v3319_v46, %s3548_s23 }
 0x92f   :  { %v3321_v50 = vpop.eup %3320 }
 0x930   :  { %1145 = vrot.lane.b32.xlu1 %v3321_v50, %s3548_s23  ;;  %v3323_v53 = vpop.eup %3322 }
 0x931   :  { %v969_v54 = vadd.f32 1.0, %v3323_v53  ;;  %v3325_v55 = vpop.eup %3324 }
 0x932   :  { %v1139_v56 = vadd.f32 1.0, %v3325_v55 }
 0x933   :  { %3326 = vrcp.f32 %v969_v54 }
 0x934   :  { %3328 = vrcp.f32 %v1139_v56 }
 0x940   :  { %v3327_v57 = vpop.eup %3326 }
 0x941   :  { %v3329_v61 = vpop.eup %3328  ;;  %v973_v0 = vmul.f32 %v3327_v57, %v3818_v15  ;;  %v2475_v15 = vrot.slane %v3828_v24, 7 }
 0x942   :  { %v1143_v4 = vmul.f32 %v3329_v61, %v3822_v18  ;;  %v2590_v18 = vrot.slane %v3774_v33, 1 }
 0x943   :  { %v2489_v21 = vsel %vm208_vm2, %v3774_v33, %v2475_v15 }
 0x944   :  { %v2604_v22 = vsel %vm208_vm2, %v2590_v18, %v3828_v24  ;;  %v1165_v24 = vld [vmem:[%s1164_s26] sm:$0x1] }
 0x945   :  { %v1167_v27 = vrot.slane %v1165_v24, 7 }
 0x947   :  { %v1169_v29 = vsel %vm208_vm2, %v1162_v28, %v1167_v27 }
 0x99a   :  { %v976_v58 = vpop.permute.xlu0 %975 }
 0x99b   :  { %v978_v59 = vmul.f32 %v3327_v57, %v976_v58 }
 0x99d   :  { %980 = vrot.lane.b32.xlu0 %v978_v59, %s3549_s27 }
 0x9a2   :  { %v1146_v62 = vpop.permute.xlu1 %1145 }
 0x9a3   :  { %v1148_v63 = vmul.f32 %v3329_v61, %v1146_v62 }
 0x9a5   :  { %1150 = vrot.lane.b32.xlu1 %v1148_v63, %s3549_s27 }
 0xa0f   :  { %v981_v1 = vpop.permute.xlu0 %980 }
 0xa10   :  { %v3872_v2 = vadd.f32 %v981_v1, %v973_v0 }
 0xa12   :  { %3330 = vtanh.f32 %v3872_v2 }
 0xa17   :  { %v1151_v5 = vpop.permute.xlu1 %1150 }
 0xa18   :  { %v3876_v6 = vadd.f32 %v1151_v5, %v1143_v4 }
 0xa1a   :  { %3332 = vtanh.f32 %v3876_v6 }
 0xa1f   :  { %v3331_v9 = vpop.eup %3330 }
 0xa20   :  { %986 = vrot.lane.b32.xlu0 %v3331_v9, %s3548_s23 }
 0xa27   :  { %v3333_v10 = vpop.eup %3332 }
 0xa28   :  { %1156 = vrot.lane.b32.xlu1 %v3333_v10, %s3548_s23 }
 0xa92   :  { %v987_v13 = vpop.permute.xlu0 %986 }
 0xa93   :  { %v989_v14 = vmul.f32 %v3327_v57, %v987_v13 }
 0xa95   :  { %1171 = vrot.lane.b32.xlu0 %v989_v14, %s3549_s27 }
 0xa9a   :  { %v1157_v16 = vpop.permute.xlu1 %1156 }
 0xa9b   :  { %v1159_v17 = vmul.f32 %v3329_v61, %v1157_v16 }
 0xa9d   :  { %v2477_v19 = vrot.slane %v1159_v17, 6  ;;  %v2592_v20 = vrot.slane %v1159_v17, 7  ;;  %1341 = vrot.lane.b32.xlu1 %v1159_v17, %s3549_s27 }
 0xa9f   :  { %v3889_v23 = vsel %vm2490_vm3, %v2489_v21, %v2477_v19  ;;  %v3891_v25 = vsel %vm2490_vm3, %v2604_v22, %v2592_v20 }
 0xb07   :  { %v1172_v26 = vpop.permute.xlu0 %1171 }
 0xb08   :  { %3097 = vmatmul.mubr.msk.f32.vlgmr.msra.gmra.mxu1 %vm93_vm0, %v1172_v26  ;;  %3108 = vmatmul.mubr.msk.f32.vlgmr.msra.gmra.mxu0 %vm93_vm0, %v1172_v26 }
 0xb09   :  { %3111 = vmatpush3.msra.mxu1 %v3705_v45  ;;  %3118 = vmatprep.mubr.msk.f32.mxu1 %vm3547_vm1, %v3546_v3 }
 0xb0a   :  { %3112 = vmatprep.subr.mxu1 %v3546_v3  ;;  %3122 = vmatpush3.msra.mxu0 %v3637_v7 }
 0xb0b   :  { %3113 = vmatpush3.msra.mxu1 %v3709_v47  ;;  %3123 = vmatprep.subr.mxu0 %v3546_v3 }
 0xb0c   :  { %3114 = vmatprep.subr.mxu1 %v3546_v3  ;;  %3124 = vmatpush3.msra.mxu0 %v3642_v8 }
 0xb0d   :  { %3115 = vmatpush3.msra.mxu1 %v3715_v48  ;;  %3125 = vmatprep.subr.mxu0 %v3546_v3 }
 0xb0e   :  { %3116 = vmatprep.subr.mxu1 %v3546_v3  ;;  %3126 = vmatpush3.msra.mxu0 %v3646_v11 }
 0xb0f   :  { %3117 = vmatpush3.msra.mxu1 %v3721_v49  ;;  %v1342_v33 = vpop.permute.xlu1 %1341  ;;  %3127 = vmatprep.subr.mxu0 %v3546_v3 }
 0xb10   :  { %3119 = vmatmul.mubr.msk.f32.vlgmr.msra.gmra.mxu1 %vm93_vm0, %v1342_v33  ;;  %3132 = vmatprep.subr.mxu1 %v3546_v3 }
 0xb11   :  { %3133 = vmatpush3.msra.mxu1 %v3687_v38  ;;  %3128 = vmatpush3.msra.mxu0 %v3650_v12 }
 0xb12   :  { %3134 = vmatprep.subr.mxu1 %v3546_v3  ;;  %3129 = vmatprep.mubr.msk.f32.mxu0 %vm3547_vm1, %v3546_v3 }
 0xb13   :  { %3135 = vmatpush3.msra.mxu1 %v3689_v39  ;;  %3143 = vmatprep.subr.mxu0 %v3546_v3 }
 0xb14   :  { %3136 = vmatprep.subr.mxu1 %v3546_v3  ;;  %3140 = vmatprep.mubr.msk.f32.mxu1 %vm3547_vm1, %v3546_v3 }
 0xb15   :  { %3137 = vmatpush3.msra.mxu1 %v3693_v40 }
 0xb16   :  { %3138 = vmatprep.subr.mxu1 %v3546_v3 }
 0xb17   :  { %3139 = vmatpush3.msra.mxu1 %v3697_v41 }
 0xb18   :  { %3154 = vmatprep.subr.mxu1 %v3546_v3 }
 0xbc8   :  { %v1241_v30 = vpop.f32.mrf.mxu1  ;;  %v1336_v31 = vpop.f32.mrf.mxu0 }
 0xbc9   :  { %v1245_v32 = vadd.f32 %v1241_v30, %v1169_v29  ;;  %v1337_v36 = vadd.f32 %v3753_v60, %v1336_v31 }
 0xbca   :  { %v3098_v34 = vpop.f32.mrf.mxu1  ;;  %v3109_v35 = vpop.f32.mrf.mxu0 }
 0xbcb   :  { %3334 = vtanh.f32 %v1245_v32  ;;  %v2799_v50 = vmul.f32 -1.442695, %v1245_v32 }
 0xbd0   :  { %v1411_v37 = vpop.f32.mrf.mxu1 }
 0xbd1   :  { %v1415_v42 = vadd.f32 %v1411_v37, %v1337_v36 }
 0xbd2   :  { %v3120_v43 = vpop.f32.mrf.mxu1 }
 0xbd3   :  { %3336 = vtanh.f32 %v1415_v42  ;;  %v2802_v51 = vmul.f32 -1.442695, %v1415_v42 }
 0xbd4   :  { %3338 = vpow2.f32 %v2799_v50 }
 0xbd5   :  { %3340 = vpow2.f32 %v2802_v51 }
 0xbd8   :  { %v3335_v44 = vpop.eup %3334 }
 0xbd9   :  { %1255 = vrot.lane.b32.xlu0 %v3335_v44, %s3548_s23 }
 0xbe0   :  { %v3337_v46 = vpop.eup %3336 }
 0xbe1   :  { %1425 = vrot.lane.b32.xlu1 %v3337_v46, %s3548_s23  ;;  %v3339_v52 = vpop.eup %3338 }
 0xbe2   :  { %v1249_v53 = vadd.f32 1.0, %v3339_v52  ;;  %v3341_v54 = vpop.eup %3340 }
 0xbe3   :  { %v1419_v55 = vadd.f32 1.0, %v3341_v54 }
 0xbe4   :  { %3342 = vrcp.f32 %v1249_v53 }
 0xbe5   :  { %3344 = vrcp.f32 %v1419_v55 }
 0xbf1   :  { %v3343_v56 = vpop.eup %3342 }
 0xbf2   :  { %v3345_v59 = vpop.eup %3344  ;;  %v1253_v63 = vmul.f32 %v3343_v56, %v3872_v2 }
 0xbf3   :  { %v1423_v4 = vmul.f32 %v3345_v59, %v3876_v6 }
 0xc4b   :  { %v1256_v57 = vpop.permute.xlu0 %1255 }
 0xc4c   :  { %v1258_v58 = vmul.f32 %v3343_v56, %v1256_v57 }
 0xc4e   :  { %1260 = vrot.lane.b32.xlu0 %v1258_v58, %s3549_s27 }
 0xc53   :  { %v1426_v61 = vpop.permute.xlu1 %1425 }
 0xc54   :  { %v1428_v62 = vmul.f32 %v3345_v59, %v1426_v61 }
 0xc56   :  { %1430 = vrot.lane.b32.xlu1 %v1428_v62, %s3549_s27 }
 0xcc0   :  { %v1261_v0 = vpop.permute.xlu0 %1260 }
 0xcc1   :  { %v3933_v1 = vadd.f32 %v1261_v0, %v1253_v63 }
 0xcc3   :  { %3346 = vtanh.f32 %v3933_v1 }
 0xcc8   :  { %v1431_v5 = vpop.permute.xlu1 %1430 }
 0xcc9   :  { %v3937_v9 = vadd.f32 %v1431_v5, %v1423_v4  ;;  %v3406_v5 = vld [vmem:[#allocation8 + $0x18] sm:$0xff] }
 0xccb   :  { %3348 = vtanh.f32 %v3937_v9 }
 0xcd0   :  { %v3347_v10 = vpop.eup %3346 }
 0xcd1   :  { %1266 = vrot.lane.b32.xlu0 %v3347_v10, %s3548_s23 }
 0xcd8   :  { %v3349_v13 = vpop.eup %3348 }
 0xcd9   :  { %1436 = vrot.lane.b32.xlu1 %v3349_v13, %s3548_s23  ;;  %v4029_v13 = vld [vmem:[#allocation7 + $0x30] sm:$0xff] }
 0xd43   :  { %v1267_v14 = vpop.permute.xlu0 %1266 }
 0xd44   :  { %v1269_v2 = vmul.f32 %v3343_v56, %v1267_v14  ;;  %v4040_v14 = vld [vmem:[#allocation7 + $0x20] sm:$0xff] }
 0xd46   :  { %1451 = vrot.lane.b32.xlu0 %v1269_v2, %s3549_s27  ;;  %v1725_v2 = vld [vmem:[%s1724_s14] sm:$0x1] }
 0xd4b   :  { %v1437_v15 = vpop.permute.xlu1 %1436 }
 0xd4c   :  { %v1439_v16 = vmul.f32 %v3345_v59, %v1437_v15  ;;  %v1727_v15 = vrot.slane %v1725_v2, 7 }
 0xd4e   :  { %v2479_v17 = vrot.slane %v1439_v16, 5  ;;  %v2594_v6 = vrot.slane %v1439_v16, 6  ;;  %1621 = vrot.lane.b32.xlu1 %v1439_v16, %s3549_s27  ;;  %v1722_v16 = vld [vmem:[%s1721_s3] sm:$0x1] }
 0xd50   :  { %v3945_v18 = vsel %vm2492_vm4, %v3889_v23, %v2479_v17  ;;  %v3948_v19 = vsel %vm2492_vm4, %v3891_v25, %v2594_v6  ;;  %v1729_v17 = vsel %vm208_vm2, %v1722_v16, %v1727_v15 }
 0xdb8   :  { %v1452_v20 = vpop.permute.xlu0 %1451 }
 0xdb9   :  { %3130 = vmatmul.mubr.msk.f32.vlgmr.msra.gmra.mxu0 %vm93_vm0, %v1452_v20  ;;  %3141 = vmatmul.mubr.msk.f32.vlgmr.msra.gmra.mxu1 %vm93_vm0, %v1452_v20 }
 0xdba   :  { %3144 = vmatpush3.msra.mxu0 %v3705_v45  ;;  %3151 = vmatprep.mubr.msk.f32.mxu0 %vm3547_vm1, %v3546_v3 }
 0xdbb   :  { %3145 = vmatprep.subr.mxu0 %v3546_v3  ;;  %3155 = vmatpush3.msra.mxu1 %v3637_v7  ;;  %v1445_v7 = vld [vmem:[%s1444_s30] sm:$0x1] }
 0xdbc   :  { %3146 = vmatpush3.msra.mxu0 %v3709_v47  ;;  %3156 = vmatprep.subr.mxu1 %v3546_v3 }
 0xdbd   :  { %3147 = vmatprep.subr.mxu0 %v3546_v3  ;;  %3157 = vmatpush3.msra.mxu1 %v3642_v8  ;;  %v1447_v8 = vrot.slane %v1445_v7, 7 }
 0xdbe   :  { %3148 = vmatpush3.msra.mxu0 %v3715_v48  ;;  %3158 = vmatprep.subr.mxu1 %v3546_v3 }
 0xdbf   :  { %3149 = vmatprep.subr.mxu0 %v3546_v3  ;;  %3159 = vmatpush3.msra.mxu1 %v3646_v11  ;;  %v1442_v11 = vld [vmem:[%s1441_s12] sm:$0x1] }
 0xdc0   :  { %3150 = vmatpush3.msra.mxu0 %v3721_v49  ;;  %v1622_v21 = vpop.permute.xlu1 %1621  ;;  %3160 = vmatprep.subr.mxu1 %v3546_v3 }
 0xdc1   :  { %3152 = vmatmul.mubr.msk.f32.vlgmr.msra.gmra.mxu0 %vm93_vm0, %v1622_v21  ;;  %3165 = vmatprep.subr.mxu0 %v3546_v3 }
 0xdc2   :  { %3166 = vmatpush3.msra.mxu0 %v3687_v38  ;;  %3161 = vmatpush3.msra.mxu1 %v3650_v12  ;;  %v1449_v12 = vsel %vm208_vm2, %v1442_v11, %v1447_v8 }
 0xdc3   :  { %3167 = vmatprep.subr.mxu0 %v3546_v3  ;;  %3162 = vmatprep.mubr.msk.f32.mxu1 %vm3547_vm1, %v3546_v3 }
 0xdc4   :  { %3168 = vmatpush3.msra.mxu0 %v3689_v39  ;;  %3173 = vmatprep.mubr.msk.f32.mxu0 %vm3547_vm1, %v3546_v3 }
 0xdc5   :  { %3169 = vmatprep.subr.mxu0 %v3546_v3  ;;  %3176 = vmatprep.subr.mxu1 %v3546_v3 }
 0xdc6   :  { %3170 = vmatpush3.msra.mxu0 %v3693_v40 }
 0xdc7   :  { %3171 = vmatprep.subr.mxu0 %v3546_v3 }
 0xdc8   :  { %3172 = vmatpush3.msra.mxu0 %v3697_v41 }
 0xdc9   :  { %3187 = vmatprep.subr.mxu0 %v3546_v3 }
 0xe79   :  { %v1521_v38 = vpop.f32.mrf.mxu0  ;;  %v1616_v39 = vpop.f32.mrf.mxu1 }
 0xe7a   :  { %v1525_v22 = vadd.f32 %v1521_v38, %v1449_v12  ;;  %v1617_v25 = vadd.f32 %v3753_v60, %v1616_v39 }
 0xe7b   :  { %v3131_v23 = vpop.f32.mrf.mxu0  ;;  %v3142_v40 = vpop.f32.mrf.mxu1 }
 0xe7c   :  { %3350 = vtanh.f32 %v1525_v22  ;;  %v2806_v28 = vmul.f32 -1.442695, %v1525_v22 }
 0xe81   :  { %v1691_v41 = vpop.f32.mrf.mxu0 }
 0xe82   :  { %v1695_v26 = vadd.f32 %v1691_v41, %v1617_v25 }
 0xe83   :  { %v3153_v33 = vpop.f32.mrf.mxu0 }
 0xe84   :  { %3352 = vtanh.f32 %v1695_v26  ;;  %v2809_v29 = vmul.f32 -1.442695, %v1695_v26 }
 0xe85   :  { %3354 = vpow2.f32 %v2806_v28 }
 0xe86   :  { %3356 = vpow2.f32 %v2809_v29 }
 0xe89   :  { %v3351_v24 = vpop.eup %3350 }
 0xe8a   :  { %1535 = vrot.lane.b32.xlu0 %v3351_v24, %s3548_s23 }
 0xe91   :  { %v3353_v27 = vpop.eup %3352 }
 0xe92   :  { %1705 = vrot.lane.b32.xlu1 %v3353_v27, %s3548_s23  ;;  %v3355_v30 = vpop.eup %3354 }
 0xe93   :  { %v1529_v31 = vadd.f32 1.0, %v3355_v30  ;;  %v3357_v32 = vpop.eup %3356 }
 0xe94   :  { %v1699_v34 = vadd.f32 1.0, %v3357_v32 }
 0xe95   :  { %3358 = vrcp.f32 %v1529_v31 }
 0xe96   :  { %3360 = vrcp.f32 %v1699_v34 }
 0xea2   :  { %v3359_v35 = vpop.eup %3358 }
 0xea3   :  { %v3361_v42 = vpop.eup %3360  ;;  %v1533_v46 = vmul.f32 %v3359_v35, %v3933_v1 }
 0xea4   :  { %v1703_v52 = vmul.f32 %v3361_v42, %v3937_v9  ;;  %v3407_v9 = vld [vmem:[#allocation8 + $0x10] sm:$0xff] }
 0xefc   :  { %v1536_v36 = vpop.permute.xlu0 %1535 }
 0xefd   :  { %v1538_v37 = vmul.f32 %v3359_v35, %v1536_v36 }
 0xeff   :  { %1540 = vrot.lane.b32.xlu0 %v1538_v37, %s3549_s27 }
 0xf04   :  { %v1706_v43 = vpop.permute.xlu1 %1705 }
 0xf05   :  { %v1708_v44 = vmul.f32 %v3361_v42, %v1706_v43 }
 0xf07   :  { %1710 = vrot.lane.b32.xlu1 %v1708_v44, %s3549_s27 }
 0xf71   :  { %v1541_v50 = vpop.permute.xlu0 %1540 }
 0xf72   :  { %v3990_v51 = vadd.f32 %v1541_v50, %v1533_v46 }
 0xf74   :  { %3362 = vtanh.f32 %v3990_v51 }
 0xf79   :  { %v1711_v53 = vpop.permute.xlu1 %1710 }
 0xf7a   :  { %v3994_v54 = vadd.f32 %v1711_v53, %v1703_v52 }
 0xf7c   :  { %3364 = vtanh.f32 %v3994_v54 }
 0xf81   :  { %v3363_v55 = vpop.eup %3362 }
 0xf82   :  { %1546 = vrot.lane.b32.xlu0 %v3363_v55, %s3548_s23 }
 0xf89   :  { %v3365_v56 = vpop.eup %3364 }
 0xf8a   :  { %1716 = vrot.lane.b32.xlu1 %v3365_v56, %s3548_s23  ;;  %v3414_v56 = vld [vmem:[#allocation8 + $0x38] sm:$0xff] }
 0xff4   :  { %v1547_v57 = vpop.permute.xlu0 %1546 }
 0xff5   :  { %v1549_v58 = vmul.f32 %v3359_v35, %v1547_v57  ;;  %v3415_v57 = vld [vmem:[#allocation8 + $0x30] sm:$0xff] }
 0xff7   :  { %1731 = vrot.lane.b32.xlu0 %v1549_v58, %s3549_s27  ;;  %v3416_v58 = vld [vmem:[#allocation8 + $0x28] sm:$0xff] }
 0xffc   :  { %v1717_v59 = vpop.permute.xlu1 %1716 }
 0xffd   :  { %v1719_v61 = vmul.f32 %v3361_v42, %v1717_v59  ;;  %v3417_v59 = vld [vmem:[#allocation8 + $0x20] sm:$0xff] }
 0xfff   :  { %v2481_v62 = vrot.slane %v1719_v61, 4  ;;  %v2596_v63 = vrot.slane %v1719_v61, 5  ;;  %1901 = vrot.lane.b32.xlu1 %v1719_v61, %s3549_s27 }
0x1001   :  { %v4002_v0 = vsel %vm2494_vm5, %v3948_v19, %v2596_v63  ;;  %v4005_v1 = vsel %vm2494_vm5, %v3945_v18, %v2481_v62  ;;  %v2005_v62 = vld [vmem:[%s2004_s1] sm:$0x1] }
0x1002   :  { %v2007_v63 = vrot.slane %v2005_v62, 7  ;;  %v2505_v62 = vld [vmem:[%s4175_s7 + $0x18] sm:$0xff] }
0x1069   :  { %v1732_v4 = vpop.permute.xlu0 %1731 }
0x106a   :  { %3163 = vmatmul.mubr.msk.f32.vlgmr.msra.gmra.mxu1 %vm93_vm0, %v1732_v4  ;;  %3174 = vmatmul.mubr.msk.f32.vlgmr.msra.gmra.mxu0 %vm93_vm0, %v1732_v4 }
0x106b   :  { %3177 = vmatpush3.msra.mxu1 %v3705_v45  ;;  %3184 = vmatprep.mubr.msk.f32.mxu1 %vm3547_vm1, %v3546_v3  ;;  %v3408_v45 = vld [vmem:[#allocation8 + $0x8] sm:$0xff] }
0x106c   :  { %3178 = vmatprep.subr.mxu1 %v3546_v3  ;;  %3188 = vmatpush3.msra.mxu0 %v3406_v5 }
0x106d   :  { %3179 = vmatpush3.msra.mxu1 %v3709_v47  ;;  %3189 = vmatprep.subr.mxu0 %v3546_v3  ;;  %v4023_v47 = vld [vmem:[#allocation7 + $0x38] sm:$0xff] }
0x106e   :  { %3180 = vmatprep.subr.mxu1 %v3546_v3  ;;  %3190 = vmatpush3.msra.mxu0 %v3407_v9 }
0x106f   :  { %3181 = vmatpush3.msra.mxu1 %v3715_v48  ;;  %3191 = vmatprep.subr.mxu0 %v3546_v3  ;;  %v3410_v48 = vld [vmem:[#allocation8] sm:$0xff] }
0x1070   :  { %3182 = vmatprep.subr.mxu1 %v3546_v3  ;;  %3192 = vmatpush3.msra.mxu0 %v3408_v45 }
0x1071   :  { %3183 = vmatpush3.msra.mxu1 %v3721_v49  ;;  %v1902_v10 = vpop.permute.xlu1 %1901  ;;  %3193 = vmatprep.subr.mxu0 %v3546_v3  ;;  %v4036_v49 = vld [vmem:[#allocation7 + $0x28] sm:$0xff] }
0x1072   :  { %3185 = vmatmul.mubr.msk.f32.vlgmr.msra.gmra.mxu1 %vm93_vm0, %v1902_v10  ;;  %3198 = vmatprep.subr.mxu1 %v3546_v3 }
0x1073   :  { %3199 = vmatpush3.msra.mxu1 %v4023_v47  ;;  %3194 = vmatpush3.msra.mxu0 %v3410_v48 }
0x1074   :  { %3200 = vmatprep.subr.mxu1 %v3546_v3  ;;  %3195 = vmatprep.mubr.msk.f32.mxu0 %vm3547_vm1, %v3546_v3 }
0x1075   :  { %3201 = vmatpush3.msra.mxu1 %v4029_v13  ;;  %3209 = vmatprep.subr.mxu0 %v3546_v3 }
0x1076   :  { %3202 = vmatprep.subr.mxu1 %v3546_v3  ;;  %3206 = vmatprep.mubr.msk.f32.mxu1 %vm3547_vm1, %v3546_v3 }
0x1077   :  { %3203 = vmatpush3.msra.mxu1 %v4036_v49 }
0x1078   :  { %3204 = vmatprep.subr.mxu1 %v3546_v3 }
0x1079   :  { %3205 = vmatpush3.msra.mxu1 %v4040_v14 }
0x107a   :  { %3220 = vmatprep.subr.mxu1 %v3546_v3 }
0x112a   :  { %v1801_v6 = vpop.f32.mrf.mxu1  ;;  %v1896_v18 = vpop.f32.mrf.mxu0 }
0x112b   :  { %v1805_v19 = vadd.f32 %v1801_v6, %v1729_v17  ;;  %v1897_v7 = vadd.f32 %v3753_v60, %v1896_v18 }
0x112c   :  { %v3164_v20 = vpop.f32.mrf.mxu1  ;;  %v3175_v21 = vpop.f32.mrf.mxu0 }
0x112d   :  { %3366 = vtanh.f32 %v1805_v19  ;;  %v2813_v22 = vmul.f32 -1.442695, %v1805_v19 }
0x1132   :  { %v1971_v8 = vpop.f32.mrf.mxu1 }
0x1133   :  { %v1975_v11 = vadd.f32 %v1971_v8, %v1897_v7 }
0x1134   :  { %v3186_v12 = vpop.f32.mrf.mxu1 }
0x1135   :  { %3368 = vtanh.f32 %v1975_v11  ;;  %v2816_v23 = vmul.f32 -1.442695, %v1975_v11 }
0x1136   :  { %3370 = vpow2.f32 %v2813_v22 }
0x1137   :  { %3372 = vpow2.f32 %v2816_v23 }
0x113a   :  { %v3367_v38 = vpop.eup %3366 }
0x113b   :  { %1815 = vrot.lane.b32.xlu0 %v3367_v38, %s3548_s23 }
0x1142   :  { %v3369_v39 = vpop.eup %3368 }
0x1143   :  { %1985 = vrot.lane.b32.xlu1 %v3369_v39, %s3548_s23  ;;  %v3371_v40 = vpop.eup %3370 }
0x1144   :  { %v1809_v25 = vadd.f32 1.0, %v3371_v40  ;;  %v3373_v41 = vpop.eup %3372 }
0x1145   :  { %v1979_v26 = vadd.f32 1.0, %v3373_v41 }
0x1146   :  { %3374 = vrcp.f32 %v1809_v25 }
0x1147   :  { %3376 = vrcp.f32 %v1979_v26 }
0x1153   :  { %v3375_v60 = vpop.eup %3374 }
0x1154   :  { %v3377_v27 = vpop.eup %3376  ;;  %v1813_v30 = vmul.f32 %v3375_v60, %v3990_v51 }
0x1155   :  { %v1983_v34 = vmul.f32 %v3377_v27, %v3994_v54 }
0x11ad   :  { %v1816_v33 = vpop.permute.xlu0 %1815 }
0x11ae   :  { %v1818_v24 = vmul.f32 %v3375_v60, %v1816_v33 }
0x11b0   :  { %1820 = vrot.lane.b32.xlu0 %v1818_v24, %s3549_s27 }
0x11b5   :  { %v1986_v28 = vpop.permute.xlu1 %1985 }
0x11b6   :  { %v1988_v29 = vmul.f32 %v3377_v27, %v1986_v28 }
0x11b8   :  { %1990 = vrot.lane.b32.xlu1 %v1988_v29, %s3549_s27 }
0x1222   :  { %v1821_v31 = vpop.permute.xlu0 %1820 }
0x1223   :  { %v4051_v32 = vadd.f32 %v1821_v31, %v1813_v30 }
0x1225   :  { %3378 = vtanh.f32 %v4051_v32 }
0x122a   :  { %v1991_v35 = vpop.permute.xlu1 %1990 }
0x122b   :  { %v4055_v36 = vadd.f32 %v1991_v35, %v1983_v34 }
0x122d   :  { %3380 = vtanh.f32 %v4055_v36 }
0x1232   :  { %v3379_v37 = vpop.eup %3378 }
0x1233   :  { %1826 = vrot.lane.b32.xlu0 %v3379_v37, %s3548_s23 }
0x123a   :  { %v3381_v42 = vpop.eup %3380 }
0x123b   :  { %1996 = vrot.lane.b32.xlu1 %v3381_v42, %s3548_s23 }
0x12a5   :  { %v1827_v43 = vpop.permute.xlu0 %1826 }
0x12a6   :  { %v1829_v44 = vmul.f32 %v3375_v60, %v1827_v43 }
0x12a8   :  { %2011 = vrot.lane.b32.xlu0 %v1829_v44, %s3549_s27 }
0x12ad   :  { %v1997_v46 = vpop.permute.xlu1 %1996 }
0x12ae   :  { %v1999_v50 = vmul.f32 %v3377_v27, %v1997_v46 }
0x12b0   :  { %v2483_v51 = vrot.slane %v1999_v50, 3  ;;  %v2598_v52 = vrot.slane %v1999_v50, 4  ;;  %2181 = vrot.lane.b32.xlu1 %v1999_v50, %s3549_s27 }
0x12b2   :  { %v4063_v53 = vsel %vm2496_vm6, %v4002_v0, %v2598_v52  ;;  %v4066_v54 = vsel %vm2496_vm6, %v4005_v1, %v2483_v51  ;;  %v2002_v0 = vld [vmem:[%s2001_s16] sm:$0x1] }
0x12b3   :  { %v2009_v1 = vsel %vm208_vm2, %v2002_v0, %v2007_v63  ;;  %v2504_v63 = vld [vmem:[%s4175_s7 + $0x10] sm:$0xff]  ;;  %v2503_v0 = vld [vmem:[%s4175_s7 + $0x8] sm:$0xff] }
0x131a   :  { %v2012_v55 = vpop.permute.xlu0 %2011 }
0x131b   :  { %3196 = vmatmul.mubr.msk.f32.vlgmr.msra.gmra.mxu0 %vm93_vm0, %v2012_v55  ;;  %3207 = vmatmul.mubr.msk.f32.vlgmr.msra.gmra.mxu1 %vm93_vm0, %v2012_v55 }
0x131c   :  { %3210 = vmatpush3.msra.mxu0 %v3414_v56  ;;  %3217 = vmatprep.mubr.msk.f32.mxu0 %vm3547_vm1, %v3546_v3 }
0x131d   :  { %3211 = vmatprep.subr.mxu0 %v3546_v3  ;;  %3221 = vmatpush3.msra.mxu1 %v4023_v47  ;;  %v3418_v47 = vld [vmem:[%s4172_s4 + $0x1] ss:$0 sm:$0xff] }
0x131e   :  { %3212 = vmatpush3.msra.mxu0 %v3415_v57  ;;  %3222 = vmatprep.subr.mxu1 %v3546_v3 }
0x131f   :  { %3213 = vmatprep.subr.mxu0 %v3546_v3  ;;  %3223 = vmatpush3.msra.mxu1 %v4029_v13 }
0x1320   :  { %3214 = vmatpush3.msra.mxu0 %v3416_v58  ;;  %3224 = vmatprep.subr.mxu1 %v3546_v3 }
0x1321   :  { %3215 = vmatprep.subr.mxu0 %v3546_v3  ;;  %3225 = vmatpush3.msra.mxu1 %v4036_v49 }
0x1322   :  { %3216 = vmatpush3.msra.mxu0 %v3417_v59  ;;  %v2182_v61 = vpop.permute.xlu1 %2181  ;;  %3226 = vmatprep.subr.mxu1 %v3546_v3 }
0x1323   :  { %3218 = vmatmul.mubr.msk.f32.vlgmr.msra.gmra.mxu0 %vm93_vm0, %v2182_v61  ;;  %3227 = vmatpush3.msra.mxu1 %v4040_v14 }
0x1324   :  { %3228 = vmatprep.mubr.msk.f32.mxu1 %vm3547_vm1, %v3546_v3  ;;  %3231 = vmatprep.subr.mxu0 %v3546_v3 }
0x1325   :  { %3232 = vmatpush3.msra.mxu0 %v3414_v56  ;;  %3239 = vmatprep.mubr.msk.f32.mxu0 %vm3547_vm1, %v3546_v3 }
0x1326   :  { %3233 = vmatprep.subr.mxu0 %v3546_v3  ;;  %3242 = vmatprep.subr.mxu1 %v3546_v3 }
0x1327   :  { %3234 = vmatpush3.msra.mxu0 %v3415_v57 }
0x1328   :  { %3235 = vmatprep.subr.mxu0 %v3546_v3 }
0x1329   :  { %3236 = vmatpush3.msra.mxu0 %v3416_v58 }
0x132a   :  { %3237 = vmatprep.subr.mxu0 %v3546_v3 }
0x132b   :  { %3238 = vmatpush3.msra.mxu0 %v3417_v59 }
0x132c   :  { %3253 = vmatprep.subr.mxu0 %v3546_v3 }
0x13db   :  { %v2081_v4 = vpop.f32.mrf.mxu0  ;;  %v2176_v5 = vpop.f32.mrf.mxu1 }
0x13dc   :  { %v2085_v9 = vadd.f32 %v2081_v4, %v2009_v1  ;;  %v2177_v48 = vadd.f32 %v3418_v47, %v2176_v5  ;;  %v2502_v1 = vld [vmem:[%s4175_s7] sm:$0xff]  ;;  %s3550_s7 = smov 96  }
0x13dd   :  { %v3197_v45 = vpop.f32.mrf.mxu0  ;;  %v3208_v10 = vpop.f32.mrf.mxu1 }
0x13de   :  { %3382 = vtanh.f32 %v2085_v9  ;;  %v2820_v16 = vmul.f32 -1.442695, %v2085_v9 }
0x13e3   :  { %v2251_v13 = vpop.f32.mrf.mxu0 }
0x13e4   :  { %v2255_v49 = vadd.f32 %v2251_v13, %v2177_v48 }
0x13e5   :  { %v3219_v14 = vpop.f32.mrf.mxu0 }
0x13e6   :  { %3384 = vtanh.f32 %v2255_v49  ;;  %v2823_v17 = vmul.f32 -1.442695, %v2255_v49 }
0x13e7   :  { %3386 = vpow2.f32 %v2820_v16 }
0x13e8   :  { %3388 = vpow2.f32 %v2823_v17 }
0x13eb   :  { %v3383_v2 = vpop.eup %3382 }
0x13ec   :  { %2095 = vrot.lane.b32.xlu0 %v3383_v2, %s3548_s23 }
0x13f3   :  { %v3385_v15 = vpop.eup %3384 }
0x13f4   :  { %2265 = vrot.lane.b32.xlu1 %v3385_v15, %s3548_s23  ;;  %v3387_v6 = vpop.eup %3386 }
0x13f5   :  { %v2089_v18 = vadd.f32 1.0, %v3387_v6  ;;  %v3389_v19 = vpop.eup %3388 }
0x13f6   :  { %v2259_v20 = vadd.f32 1.0, %v3389_v19 }
0x13f7   :  { %3390 = vrcp.f32 %v2089_v18 }
0x13f8   :  { %3392 = vrcp.f32 %v2259_v20 }
0x1404   :  { %v3391_v21 = vpop.eup %3390 }
0x1405   :  { %v3393_v11 = vpop.eup %3392  ;;  %v2093_v39 = vmul.f32 %v3391_v21, %v4051_v32 }
0x1406   :  { %v2263_v40 = vmul.f32 %v3393_v11, %v4055_v36 }
0x145e   :  { %v2096_v7 = vpop.permute.xlu0 %2095 }
0x145f   :  { %v2098_v8 = vmul.f32 %v3391_v21, %v2096_v7 }
0x1461   :  { %2100 = vrot.lane.b32.xlu0 %v2098_v8, %s3549_s27 }
0x1466   :  { %v2266_v12 = vpop.permute.xlu1 %2265 }
0x1467   :  { %v2268_v38 = vmul.f32 %v3393_v11, %v2266_v12 }
0x1469   :  { %2270 = vrot.lane.b32.xlu1 %v2268_v38, %s3549_s27 }
0x14d3   :  { %v2101_v22 = vpop.permute.xlu0 %2100 }
0x14d4   :  { %v4102_v23 = vadd.f32 %v2101_v22, %v2093_v39 }
0x14d6   :  { %3394 = vtanh.f32 %v4102_v23 }
0x14db   :  { %v2271_v25 = vpop.permute.xlu1 %2270 }
0x14dc   :  { %v2273_v41 = vadd.f32 %v2271_v25, %v2263_v40 }
0x14de   :  { %3396 = vtanh.f32 %v2273_v41 }
0x14e3   :  { %v3395_v26 = vpop.eup %3394 }
0x14e4   :  { %2106 = vrot.lane.b32.xlu0 %v3395_v26, %s3548_s23 }
0x14eb   :  { %v3397_v60 = vpop.eup %3396 }
0x14ec   :  { %2276 = vrot.lane.b32.xlu1 %v3397_v60, %s3548_s23 }
0x1556   :  { %v2107_v33 = vpop.permute.xlu0 %2106 }
0x1557   :  { %v2109_v24 = vmul.f32 %v3391_v21, %v2107_v33 }
0x1559   :  { %2281 = vrot.lane.b32.xlu0 %v2109_v24, %s3549_s27 }
0x155e   :  { %v2277_v27 = vpop.permute.xlu1 %2276 }
0x155f   :  { %v2279_v28 = vmul.f32 %v3393_v11, %v2277_v27 }
0x1561   :  { %v2485_v29 = vrot.slane %v2279_v28, 2  ;;  %v2600_v30 = vrot.slane %v2279_v28, 3  ;;  %2356 = vrot.lane.b32.xlu1 %v2279_v28, %s3549_s27 }
0x1563   :  { %v2609_v31 = vsel %vm2498_vm7, %v4063_v53, %v2600_v30  ;;  %v2499_v32 = vsel %vm2498_vm7, %v4066_v54, %v2485_v29 }
0x15cb   :  { %v2282_v34 = vpop.permute.xlu0 %2281 }
0x15cc   :  { %2457 = vst.msk [vmem:[#allocation11] sm:$0x3] %vm2456_vm8, %v2282_v34  ;;  %3229 = vmatmul.mubr.msk.f32.vlgmr.msra.gmra.mxu1 %vm93_vm0, %v2282_v34 }
0x15cd   :  { %3250 = vmatprep.mubr.msk.f32.mxu1 %vm3547_vm1, %v3546_v3  ;;  %3243 = vmatpush3.msra.mxu1 %v2505_v62 }
0x15ce   :  { %3244 = vmatprep.subr.mxu1 %v3546_v3 }
0x15cf   :  { %3245 = vmatpush3.msra.mxu1 %v2504_v63 }
0x15d0   :  { %3246 = vmatprep.subr.mxu1 %v3546_v3 }
0x15d1   :  { %3247 = vmatpush3.msra.mxu1 %v2503_v0 }
0x15d2   :  { %3248 = vmatprep.subr.mxu1 %v3546_v3 }
0x15d3   :  { %v2357_v35 = vpop.permute.xlu1 %2356  ;;  %3249 = vmatpush3.msra.mxu1 %v2502_v1 }
0x15d4   :  { %3240 = vmatmul.mubr.msk.f32.vlgmr.msra.gmra.mxu0 %vm93_vm0, %v2357_v35 }
0x15d5   :  { %3261 = vmatprep.mubr.msk.f32.mxu0 %vm3547_vm1, %v3546_v3  ;;  %3254 = vmatpush3.msra.mxu0 %v2505_v62 }
0x15d6   :  { %3255 = vmatprep.subr.mxu0 %v3546_v3 }
0x15d7   :  { %3256 = vmatpush3.msra.mxu0 %v2504_v63 }
0x15d8   :  { %3257 = vmatprep.subr.mxu0 %v3546_v3 }
0x15d9   :  { %3258 = vmatpush3.msra.mxu0 %v2503_v0 }
0x15da   :  { %3259 = vmatprep.subr.mxu0 %v3546_v3 }
0x15db   :  { %3260 = vmatpush3.msra.mxu0 %v2502_v1 }
0x168c   :  { %v2351_v36 = vpop.f32.mrf.mxu1 }
0x168d   :  { %v2352_v42 = vadd.f32 %v3418_v47, %v2351_v36 }
0x168e   :  { %v3230_v37 = vpop.f32.mrf.mxu1 }
0x1694   :  { %v2426_v43 = vpop.f32.mrf.mxu0 }
0x1695   :  { %v2430_v44 = vadd.f32 %v2426_v43, %v2352_v42 }
0x1696   :  { %v3241_v46 = vpop.f32.mrf.mxu0 }
0x1697   :  { %3398 = vtanh.f32 %v2430_v44  ;;  %v2826_v51 = vmul.f32 -1.442695, %v2430_v44 }
0x1699   :  { %3400 = vpow2.f32 %v2826_v51 }
0x16a4   :  { %v3399_v50 = vpop.eup %3398 }
0x16a5   :  { %2440 = vrot.lane.b32.xlu0 %v3399_v50, %s3548_s23 }
0x16a6   :  { %v3401_v52 = vpop.eup %3400 }
0x16a7   :  { %v2434_v53 = vadd.f32 1.0, %v3401_v52 }
0x16a9   :  { %3402 = vrcp.f32 %v2434_v53 }
0x16b6   :  { %v3403_v54 = vpop.eup %3402 }
0x16b7   :  { %v2438_v57 = vmul.f32 %v3403_v54, %v2273_v41 }
0x1717   :  { %v2441_v55 = vpop.permute.xlu0 %2440 }
0x1718   :  { %v2443_v56 = vmul.f32 %v3403_v54, %v2441_v55 }
0x171a   :  { %2445 = vrot.lane.b32.xlu1 %v2443_v56, %s3549_s27 }
0x178c   :  { %v2446_v58 = vpop.permute.xlu1 %2445 }
0x178d   :  { %v2448_v59 = vadd.f32 %v2446_v58, %v2438_v57 }
0x178f   :  { %3404 = vtanh.f32 %v2448_v59 }
0x179c   :  { %v3405_v61 = vpop.eup %3404 }
0x179d   :  { %2451 = vrot.lane.b32.xlu0 %v3405_v61, %s3548_s23 }
0x180f   :  { %v2452_v4 = vpop.permute.xlu0 %2451 }
0x1810   :  { %v2454_v5 = vmul.f32 %v3403_v54, %v2452_v4 }
0x1812   :  { %v2487_v9 = vrot.slane %v2454_v5, 1  ;;  %v2602_v45 = vrot.slane %v2454_v5, 2 }
0x1814   :  { %v2610_v10 = vsel %vm2500_vm9, %v2609_v31, %v2602_v45  ;;  %v2501_v47 = vsel %vm2500_vm9, %v2499_v32, %v2487_v9 }
0x1815   :  { %2623 = vrot.lane.b32.xlu0 %v2610_v10, %s3549_s27  ;;  %2514 = vrot.lane.b32.xlu1 %v2501_v47, %s3549_s27 }
0x1819   :  { %2459 = vrot.lane.b32.xlu0 %v4102_v23, %s3550_s7  ;;  %2464 = vrot.lane.b32.xlu1 %v2454_v5, %s3549_s27 }
0x181d   :  { %2470 = vrot.lane.b32.xlu1 %v2448_v59, %s3550_s7 }
0x1887   :  { %v2624_v3 = vpop.permute.xlu0 %2623  ;;  %v2515_v48 = vpop.permute.xlu1 %2514 }
0x1888   :  { %3251 = vmatmul.mubr.msk.f32.vlgmr.msra.gmra.mxu1 %vm93_vm0, %v2515_v48  ;;  %3262 = vmatmul.mubr.msk.f32.vlgmr.msra.gmra.mxu0 %vm93_vm0, %v2624_v3 }
0x188b   :  { %v2460_v13 = vpop.permute.xlu0 %2459  ;;  %v2465_v49 = vpop.permute.xlu1 %2464 }
0x188c   :  { %2462 = vst.msk [vmem:[#allocation13] sm:$0x3] %vm2456_vm8, %v2460_v13  ;;  %2468 = vst.msk [vmem:[#allocation11 + $0x2] sm:$0x3] %vm2456_vm8, %v2465_v49 }
0x188f   :  { %v2471_v14 = vpop.permute.xlu1 %2470 }
0x1890   :  { %2474 = vst.msk [vmem:[#allocation13 + $0x2] sm:$0x3] %vm2456_vm8, %v2471_v14 }
0x1891   :  { %3482 = shalt.err (!%p3479_p5)
}
0x1892   :  { %s3552_s30 = smov 2   ;;  %s3553_s2 = smov [#allocation13]  }
0x1893   :  { %2722 = dma.vmem_to_hbm [thread:$0]  %s2717_s29, 64, %s4178_s10, [#allocation12], %s3549_s27, %s3549_s27, %s3552_s30  }
0x1894   :  { %s2728_s14 = sshll.u32 %s3553_s2, 4  ;;  %s2729_s14 = int_to_ptr.vmem [resolvable:$true] %s2728_s14 }
0x1895   :  { %s3491_s3 = scalar_lea.vmem %s2729_s14, 64  ;;  %p3496_p7 = scmp.lt.s32.totalorder %s2729_s14, %s2729_s14 }
0x1896   :  { %p3492_p6 = scmp.ne.s32.totalorder %s2729_s14, %s3491_s3  ;;  %p3497_p8 = scmp.lt.s32.totalorder %s3491_s3, %s3491_s3 }
0x1898   :  { %p3498_p9 = por %p3497_p8, %p3496_p7 }
0x189a   :  { %p3499_p10 = pnand %p3498_p9, %p3492_p6 }
0x189c   :  { %3502 = shalt.err (!%p3499_p10)
}
0x189d   :  { %2734 = dma.vmem_to_hbm [thread:$0]  %s2729_s14, 64, %s4179_s11, [#allocation12], %s3549_s27, %s3549_s27, %s3552_s30   ;;  %vm2588_vm10 = vcmask 80896  }
0x189e   :  { %v2827_v2 = vld [vmem:[%s4176_s8] ss:$0 sm:$0xff]  ;;  %s3554_s10 = smov [#allocation10]  }
0x189f   :  { %s2704_s17 = sshll.u32 %s3554_s10, 4  ;;  %s2705_s17 = int_to_ptr.vmem [resolvable:$true] %s2704_s17 }
0x18a0   :  { %s3511_s18 = scalar_lea.vmem %s2705_s17, 256  ;;  %p3516_p12 = scmp.lt.s32.totalorder %s2705_s17, %s2705_s17 }
0x18a1   :  { %p3512_p11 = scmp.ne.s32.totalorder %s2705_s17, %s3511_s18  ;;  %p3517_p13 = scmp.lt.s32.totalorder %s3511_s18, %s3511_s18 }
0x18a3   :  { %p3518_p0 = por %p3517_p13, %p3516_p12 }
0x18a5   :  { %p3519_p1 = pnand %p3518_p0, %p3512_p11 }
0x1948   :  { %v2584_v15 = vpop.f32.mrf.mxu1  ;;  %v2693_v16 = vpop.f32.mrf.mxu0 }
0x1949   :  { %v2585_v17 = vadd.f32 %v2827_v2, %v2584_v15  ;;  %v2694_v6 = vadd.f32 %v2827_v2, %v2693_v16 }
0x194a   :  { %v3252_v18 = vpop.f32.mrf.mxu1  ;;  %v3263_v19 = vpop.f32.mrf.mxu0 }
0x194b   :  { %2589 = vst.msk [vmem:[#allocation10] sm:$0xff] %vm2588_vm10, %v2585_v17  ;;  %2698 = vst.msk [vmem:[#allocation10 + $0x8] sm:$0xff] %vm2588_vm10, %v2694_v6 }
0x194c   :  { %3522 = shalt.err (!%p3519_p1)
}
0x194d   :  { %2710 = dma.vmem_to_hbm [thread:$0]  %s2705_s17, 256, %s4177_s9, [#allocation5], %s3543_s0, %s3543_s0, %s3544_s25  }
0x194e   :  { %3537 = dma.done.wait [#allocation5], 256  }
0x194f   :  { %3538 = vsyncadd [#allocation5], 4294967040 }
0x1950   :  { %3539 = dma.done.wait [#allocation12], 128  }
0x1951   :  { %3540 = vsyncadd [#allocation12], 4294967168 }
0x1952   :  { %2744 = vsyncpa [#allocation4], 1 }
0x1953   :  { %2745 = vsyncpa [#allocation9], 1 }
0x1954   :  { %2746 = vsyncpa [#allocation5], 1 }
0x1955   :  { %2747 = vsyncpa [#allocation12], 1 }
0x1956   :  { %2748 = vsyncpa [#allocation6], 1 }

</bundles_post_ra>
